<compile_context>
chip_gen: v5e
topology: v5e:2x2
jax: 0.10.0
libtpu: 0.0.40
codegen_flags: <defaults>
</compile_context>

<pallas_src>
import functools

import jax
import jax.numpy as jnp
from jax.experimental import pallas as pl
from jax.experimental.pallas import tpu as pltpu

BN_EPS = 1e-5


def _round_up(x, m):
    return (x + m - 1) // m * m


def _cdiv(a, b):
    return -(-a // b)


# ---------------------------------------------------------------------------
# Kernel 1: baseconv + fused block-diagonal level-A convs + 3 chained convs
#           + per-tile per-channel sum / sum-of-squares for the BN reduction.
# ---------------------------------------------------------------------------
def _conv_stats_kernel(xe_ref, xo_ref, wb_ref, wbd_ref, wch_ref,
                       xall_ref, stats_ref, pad256_ref, pad64_ref,
                       *, compute_dtype, l0):
    TN = xe_ref.shape[0]
    L = l0
    M = TN * L

    # ---- baseconv (k=4, stride=2, pad=1): build the 4-tap patches in VMEM
    #      from the even/odd row split; one fat (M,512)@(512,256) MXU dot. ----
    patches = jnp.concatenate(
        [xe_ref[:, 0:L, :], xo_ref[:, 0:L, :],
         xe_ref[:, 1:L + 1, :], xo_ref[:, 1:L + 1, :]],
        axis=-1).reshape(M, 512)
    x0 = jnp.dot(patches, wb_ref[...], preferred_element_type=jnp.float32)
    x0_c = x0.astype(compute_dtype).reshape(TN, L, 256)

    def im2col5(scr_ref, a, c):
        # 'same'-padded k=5 taps via a persistent VMEM pad buffer: zero the
        # 2-row halos, write the interior once, read 5 shifted sublane views.
        zero2 = jnp.zeros((TN, 2, c), a.dtype)
        scr_ref[:, 0:2, :] = zero2
        scr_ref[:, L + 2:L + 4, :] = zero2
        scr_ref[:, 2:L + 2, :] = a
        taps = [scr_ref[:, k:k + L, :] for k in range(5)]
        return jnp.concatenate(taps, axis=-1).reshape(M, 5 * c)

    # ---- level A: the four independent convs of the x0 slices fused into one
    #      lane-dense (M,1280)@(1280,256) block-diagonal MXU dot. ----
    y_a = jnp.dot(im2col5(pad256_ref, x0_c, 256), wbd_ref[...],
                  preferred_element_type=jnp.float32)            # (M, 256) f32

    # ---- chained levels: conv(cat(a,b),w) == conv(a,wA) + conv(b,wB); the
    #      "A" half is already in y_a, the "B" half is a (M,320)@(320,64) dot.
    def chain(prev_f32, widx, base_f32):
        prev = prev_f32.astype(compute_dtype).reshape(TN, L, 64)
        cols = im2col5(pad64_ref, prev, 64)
        return base_f32 + jnp.dot(cols, wch_ref[widx],
                                  preferred_element_type=jnp.float32)

    x1 = y_a[:, 0:64]
    x2 = chain(x1, 0, y_a[:, 64:128])
    x3 = chain(x2, 1, y_a[:, 128:192])
    x4 = chain(x3, 2, y_a[:, 192:256])

    # ---- lane-dense 256-wide store + per-tile BN partial stats (f32). ----
    x_cat = jnp.concatenate([x1, x2, x3, x4], axis=-1)           # (M, 256) f32
    xall_ref[...] = x_cat.reshape(TN, L, 256).astype(xall_ref.dtype)
    stats_ref[0] = jnp.concatenate(
        [jnp.sum(x_cat, axis=0, keepdims=True),
         jnp.sum(x_cat * x_cat, axis=0, keepdims=True)], axis=0)  # (2, 256)


# ---------------------------------------------------------------------------
# Kernel 2: apply BatchNorm (precomputed scale/shift) + ReLU, row-tiled over
#           the collapsed M = N*L0 axis, lane-dense 256-wide blocks.
# ---------------------------------------------------------------------------
def _bn_relu_kernel(x_ref, scale_ref, shift_ref, o_ref):
    x = x_ref[...].astype(jnp.float32)
    o_ref[...] = jnp.maximum(x * scale_ref[...] + shift_ref[...],
                             0.0).astype(o_ref.dtype)


# ---------------------------------------------------------------------------
# Wrapper: layout glue + two pallas_calls + tiny cross-tile BN reduction.
# ---------------------------------------------------------------------------
def mlmod5_forward(x_ncl, wb, w1, w2, w3, w4, gamma, beta, *,
                   compute_dtype=jnp.bfloat16, out_dtype=jnp.float32,
                   target_rows=512, tile_m=1024):
    """x_ncl: (N, 128, L) f32 (PyTorch NCL). Returns (N, L0, 256) NLC."""
    N, Cin, L = x_ncl.shape
    assert Cin == 128
    K0, stride0, pad0 = 4, 2, 1
    L0 = (L + 2 * pad0 - K0) // stride0 + 1
    assert L0 >= 1

    inter_dtype = compute_dtype       # bf16 x_all intermediate on the fast path
    icd = jnp.dtype(compute_dtype).itemsize
    iid = jnp.dtype(inter_dtype).itemsize

    # ---- glue: NLC layout, conv zero-pad, even/odd split so the stride-2/k=4
    #      patches can be assembled in VMEM inside kernel 1 (halves input DMA).
    x_nlc = jnp.transpose(x_ncl, (0, 2, 1))                      # (N, L, 128)
    need = 2 * L0 + 2                                            # rows baseconv reads
    x_pad = jnp.pad(x_nlc, ((0, 0), (pad0, pad0), (0, 0)))[:, :need, :]
    x_pad = x_pad.astype(compute_dtype)
    xe = x_pad[:, 0::2, :]                                       # (N, L0+1, 128)
    xo = x_pad[:, 1::2, :]                                       # (N, L0+1, 128)

    # ---- weight packing ----
    def to_mat(w):                      # torch (O, I, K) -> (K*I, O), tap-major
        O, I, K = w.shape
        return jnp.transpose(w, (2, 1, 0)).reshape(K * I, O)

    wb_flat = to_mat(wb).astype(compute_dtype)                   # (512, 256)

    # Block-diagonal weight: four independent x0-slice convs fused into one
    # 256-wide matmul (row = tap*256 + cin, col = cout).
    w_bd = jnp.zeros((5, 256, 256), jnp.float32)
    for g, wg in enumerate((w1, w2[:, :64, :], w3[:, :64, :], w4[:, :64, :])):
        w_bd = w_bd.at[:, 64 * g:64 * (g + 1), 64 * g:64 * (g + 1)].set(
            jnp.transpose(wg, (2, 1, 0)))
    w_bd = w_bd.reshape(5 * 256, 256).astype(compute_dtype)      # (1280, 256)

    # Cin-split weights for the chained convs (replaces torch.cat on inputs).
    w_chain = jnp.stack(
        [to_mat(w2[:, 64:, :]), to_mat(w3[:, 64:, :]), to_mat(w4[:, 64:, :])]
    ).astype(compute_dtype)                                      # (3, 320, 64)

    # ---- tile_n: fill the MXU (>= target_rows rows/tile) within the VMEM
    #      budget of the current generation (64 MiB/TC on v7x, 128 on v5e/v6e).
    vmem_cap = 64 * 1024 * 1024
    try:
        vmem_cap = getattr(pltpu.get_tpu_info(), "vmem_capacity_bytes", vmem_cap)
    except Exception:
        pass
    vmem_budget = min(int(vmem_cap) * 3 // 4, 96 * 1024 * 1024)

    def vmem_est(tn):
        m = tn * L0
        inp = 2 * 2 * tn * (L0 + 1) * 128 * icd                  # double-buffered
        wgt = 2 * (512 * 256 + 1280 * 256 + 3 * 320 * 64) * icd
        outp = 2 * (tn * L0 * 256 * iid + 2 * 256 * 4)
        scr = tn * (L0 + 4) * (256 + 64) * icd
        live = m * (512 * icd + 256 * 4 + 1280 * icd + 2 * 256 * 4
                    + 5 * 64 * icd + 256 * 4)
        return inp + wgt + outp + scr + live

    tile_n = max(1, min(N, _cdiv(target_rows, L0)))
    while tile_n > 1 and vmem_est(tile_n) > vmem_budget:
        tile_n = _cdiv(tile_n, 2)

    n_tiles = _cdiv(N, tile_n)
    n_pad = n_tiles * tile_n
    if n_pad != N:                      # remainder tiles: zero rows, conv(0)=0
        pad = ((0, n_pad - N), (0, 0), (0, 0))
        xe, xo = jnp.pad(xe, pad), jnp.pad(xo, pad)

    m_total = N * L0
    flops1 = 2 * (512 * 256 + 1280 * 256 + 3 * 320 * 64) * n_pad * L0
    bytes1 = (2 * n_pad * (L0 + 1) * 128 * icd
              + (512 * 256 + 1280 * 256 + 3 * 320 * 64) * icd
              + n_pad * L0 * 256 * iid + n_tiles * 2 * 256 * 4)

    x_all, stats = pl.pallas_call(
        functools.partial(_conv_stats_kernel,
                          compute_dtype=compute_dtype, l0=L0),
        grid=(n_tiles,),
        in_specs=[
            pl.BlockSpec((tile_n, L0 + 1, 128), lambda i: (i, 0, 0)),   # xe
            pl.BlockSpec((tile_n, L0 + 1, 128), lambda i: (i, 0, 0)),   # xo
            pl.BlockSpec((512, 256), lambda i: (0, 0)),                 # wb
            pl.BlockSpec((1280, 256), lambda i: (0, 0)),                # w_bd
            pl.BlockSpec((3, 320, 64), lambda i: (0, 0, 0)),            # w_chain
        ],
        out_specs=(
            pl.BlockSpec((tile_n, L0, 256), lambda i: (i, 0, 0)),
            pl.BlockSpec((1, 2, 256), lambda i: (i, 0, 0)),
        ),
        out_shape=(
            jax.ShapeDtypeStruct((n_pad, L0, 256), inter_dtype),
            jax.ShapeDtypeStruct((n_tiles, 2, 256), jnp.float32),
        ),
        scratch_shapes=[
            pltpu.VMEM((tile_n, L0 + 4, 256), compute_dtype),   # 256-wide pad buf
            pltpu.VMEM((tile_n, L0 + 4, 64), compute_dtype),    # 64-wide pad buf
        ],
        compiler_params=pltpu.CompilerParams(
            dimension_semantics=("parallel",),
            vmem_limit_bytes=vmem_budget),
        cost_estimate=pl.CostEstimate(
            flops=flops1, transcendentals=0, bytes_accessed=bytes1),
    )(xe, xo, wb_flat, w_bd, w_chain)

    # ---- tiny cross-tile BN reduction (training-mode, biased variance).
    #      Single-pass E[x^2]-E[x]^2 in f32; clamped at 0 for safety.
    tot = jnp.sum(stats, axis=0)                                 # (2, 256)
    cnt = jnp.float32(m_total)
    mean = tot[0] / cnt
    var = jnp.maximum(tot[1] / cnt - mean * mean, 0.0)
    inv = gamma * jax.lax.rsqrt(var + BN_EPS)
    scale = inv.reshape(1, 256).astype(jnp.float32)
    shift = (beta - mean * inv).reshape(1, 256).astype(jnp.float32)

    # ---- pass 2: BN + ReLU, row-tiled over M = N*L0, lane-dense 256-wide ----
    x_flat = x_all.reshape(n_pad * L0, 256)[:m_total]
    tm = min(tile_m, _round_up(m_total, 8))
    m_pad = _round_up(m_total, tm)
    if m_pad != m_total:
        x_flat = jnp.pad(x_flat, ((0, m_pad - m_total), (0, 0)))

    io_alias = {0: 0} if jnp.dtype(inter_dtype) == jnp.dtype(out_dtype) else {}
    out_flat = pl.pallas_call(
        _bn_relu_kernel,
        grid=(m_pad // tm,),
        in_specs=[
            pl.BlockSpec((tm, 256), lambda i: (i, 0)),
            pl.BlockSpec((1, 256), lambda i: (0, 0)),
            pl.BlockSpec((1, 256), lambda i: (0, 0)),
        ],
        out_specs=pl.BlockSpec((tm, 256), lambda i: (i, 0)),
        out_shape=jax.ShapeDtypeStruct((m_pad, 256), out_dtype),
        input_output_aliases=io_alias,
        compiler_params=pltpu.CompilerParams(
            dimension_semantics=("parallel",),
            vmem_limit_bytes=vmem_budget),
        cost_estimate=pl.CostEstimate(
            flops=2 * m_pad * 256, transcendentals=0,
            bytes_accessed=m_pad * 256 * (iid + jnp.dtype(out_dtype).itemsize)
            + 2 * 256 * 4),
    )(x_flat, scale, shift)

    return out_flat[:m_total].reshape(N, L0, 256)


# ---------------- pure-JAX reference (PyTorch semantics, NCL) ----------------
def _ref_forward(x, wb, w1, w2, w3, w4, gamma, beta):
    def conv(inp, w, stride, pad):
        return jax.lax.conv_general_dilated(
            inp, w, window_strides=(stride,), padding=[(pad, pad)],
            dimension_numbers=('NCH', 'OIH', 'NCH'))

    x0 = conv(x, wb, 2, 1)
    s = [x0[:, i * 64:(i + 1) * 64, :] for i in range(4)]
    x1 = conv(s[0], w1, 1, 2)
    x2 = conv(jnp.concatenate([s[1], x1], axis=1), w2, 1, 2)
    x3 = conv(jnp.concatenate([s[2], x2], axis=1), w3, 1, 2)
    x4 = conv(jnp.concatenate([s[3], x3], axis=1), w4, 1, 2)
    x_all = jnp.concatenate([x1, x2, x3, x4], axis=1)            # (N, 256, L0)
    mean = jnp.mean(x_all, axis=(0, 2), keepdims=True)
    var = jnp.mean((x_all - mean) ** 2, axis=(0, 2), keepdims=True)
    xn = (x_all - mean) / jnp.sqrt(var + BN_EPS)
    y = xn * gamma[None, :, None] + beta[None, :, None]
    return jnp.maximum(y, 0.0)


if __name__ == "__main__":
    key = jax.random.PRNGKey(0)
    kx, kb, k1, k2, k3, k4 = jax.random.split(key, 6)

    N, L = 2, 16                                                 # input (2, 128, 16)
    x = jax.random.normal(kx, (N, 128, L), dtype=jnp.float32)

    # deterministic synthetic parameters (PyTorch Conv1d weight layout: O, I, K)
    wb = 0.05 * jax.random.normal(kb, (256, 128, 4), dtype=jnp.float32)
    w1 = 0.05 * jax.random.normal(k1, (64, 64, 5), dtype=jnp.float32)
    w2 = 0.05 * jax.random.normal(k2, (64, 128, 5), dtype=jnp.float32)
    w3 = 0.05 * jax.random.normal(k3, (64, 128, 5), dtype=jnp.float32)
    w4 = 0.05 * jax.random.normal(k4, (64, 128, 5), dtype=jnp.float32)
    gamma = jnp.ones((256,), jnp.float32)
    beta = jnp.zeros((256,), jnp.float32)

    ref_ncl = _ref_forward(x, wb, w1, w2, w3, w4, gamma, beta)   # (2, 256, 8)

    # Exact-semantics check: f32 MXU path must match the lax.conv reference.
    out_f32 = jax.block_until_ready(mlmod5_forward(
        x, wb, w1, w2, w3, w4, gamma, beta, compute_dtype=jnp.float32))
    err_f32 = float(jnp.max(jnp.abs(jnp.transpose(out_f32, (0, 2, 1)) - ref_ncl)))
    assert err_f32 < 1e-3, f"f32 path mismatch vs reference: {err_f32}"

    # Fast path: bf16 MXU operands + bf16 x_all intermediate, f32 accumulation
    # and f32 BN statistics (bf16 rounding through two matmul levels and the
    # stored intermediate -> looser tolerance on the BN-normalized output).
    out_bf16 = jax.block_until_ready(mlmod5_forward(
        x, wb, w1, w2, w3, w4, gamma, beta, compute_dtype=jnp.bfloat16))
    err_bf16 = float(jnp.max(jnp.abs(jnp.transpose(out_bf16, (0, 2, 1)) - ref_ncl)))
    assert err_bf16 < 1e-1, f"bf16 path mismatch vs reference: {err_bf16}"

    print("KERNEL_OK")
</pallas_src>

<mosaic_0001>
module attributes {stable_mosaic.version = 11 : i64} {
  func.func @_conv_stats_kernel(%arg0: i32, %arg1: memref<2x9x128xf32, #tpu.memory_space<vmem>>, %arg2: memref<2x9x128xf32, #tpu.memory_space<vmem>>, %arg3: memref<512x256xf32, #tpu.memory_space<vmem>>, %arg4: memref<1280x256xf32, #tpu.memory_space<vmem>>, %arg5: memref<3x320x64xf32, #tpu.memory_space<vmem>>, %arg6: memref<2x8x256xf32, #tpu.memory_space<vmem>>, %arg7: memref<1x2x256xf32, #tpu.memory_space<vmem>>, %arg8: memref<2x12x256xf32, #tpu.memory_space<vmem>>, %arg9: memref<2x12x64xf32, #tpu.memory_space<vmem>>) attributes {dimension_semantics = [#tpu.dimension_semantics<parallel>], iteration_bounds = array<i64: 1>, scalar_prefetch = 0 : i64, scratch_operands = 2 : i64, tpu.core_type = #tpu.core_type<tc>, window_params = [{transform_indices = @transform_0, window_bounds = array<i64: 2, 9, 128>}, {transform_indices = @transform_1, window_bounds = array<i64: 2, 9, 128>}, {pipeline_mode = #tpu.pipeline_mode<synchronous>, transform_indices = @transform_2, window_bounds = array<i64: 512, 256>}, {pipeline_mode = #tpu.pipeline_mode<synchronous>, transform_indices = @transform_3, window_bounds = array<i64: 1280, 256>}, {pipeline_mode = #tpu.pipeline_mode<synchronous>, transform_indices = @transform_4, window_bounds = array<i64: 3, 320, 64>}, {transform_indices = @transform_5, window_bounds = array<i64: 2, 8, 256>}, {transform_indices = @transform_6, window_bounds = array<i64: 1, 2, 256>}]} {
    %c0 = arith.constant 0 : index
    %c0_0 = arith.constant 0 : index
    %c0_1 = arith.constant 0 : index
    %0 = vector.load %arg1[%c0, %c0_0, %c0_1] : memref<2x9x128xf32, #tpu.memory_space<vmem>>, vector<2x8x128xf32>
    %c0_2 = arith.constant 0 : index
    %c0_3 = arith.constant 0 : index
    %c0_4 = arith.constant 0 : index
    %1 = vector.load %arg2[%c0_2, %c0_3, %c0_4] : memref<2x9x128xf32, #tpu.memory_space<vmem>>, vector<2x8x128xf32>
    %c0_5 = arith.constant 0 : index
    %c1 = arith.constant 1 : index
    %c0_6 = arith.constant 0 : index
    %2 = vector.load %arg1[%c0_5, %c1, %c0_6] : memref<2x9x128xf32, #tpu.memory_space<vmem>>, vector<2x8x128xf32>
    %c0_7 = arith.constant 0 : index
    %c1_8 = arith.constant 1 : index
    %c0_9 = arith.constant 0 : index
    %3 = vector.load %arg2[%c0_7, %c1_8, %c0_9] : memref<2x9x128xf32, #tpu.memory_space<vmem>>, vector<2x8x128xf32>
    %4 = tpu.concatenate %0, %1, %2, %3 in 2 : vector<2x8x128xf32>, vector<2x8x128xf32>, vector<2x8x128xf32>, vector<2x8x128xf32> -> vector<2x8x512xf32>
    %5 = vector.shape_cast %4 : vector<2x8x512xf32> to vector<16x512xf32>
    %c0_10 = arith.constant 0 : index
    %c0_11 = arith.constant 0 : index
    %6 = vector.load %arg3[%c0_10, %c0_11] : memref<512x256xf32, #tpu.memory_space<vmem>>, vector<512x256xf32>
    %cst = arith.constant dense<0.000000e+00> : vector<16x256xf32>
    %7 = tpu.matmul %5, %6, %cst {dimension_numbers = #tpu.dot_dimension_numbers<[1], [0], [0], [1], [0, 0, 1, 1], [], []>} : vector<16x512xf32>, vector<512x256xf32>, vector<16x256xf32> -> vector<16x256xf32>
    %8 = vector.shape_cast %7 : vector<16x256xf32> to vector<2x8x256xf32>
    %cst_12 = arith.constant 0.000000e+00 : f32
    %9 = vector.broadcast %cst_12 : f32 to vector<2x2x256xf32>
    %c0_13 = arith.constant 0 : index
    %c0_14 = arith.constant 0 : index
    %c0_15 = arith.constant 0 : index
    %10 = vector.load %arg8[%c0_13, %c0_14, %c0_15] : memref<2x12x256xf32, #tpu.memory_space<vmem>>, vector<2x2x256xf32>
    tpu.vector_store %arg8[%c0_13, %c0_14, %c0_15], %9 {strides = array<i32>} : memref<2x12x256xf32, #tpu.memory_space<vmem>>, vector<2x2x256xf32>,
    %c0_16 = arith.constant 0 : index
    %c10 = arith.constant 10 : index
    %c0_17 = arith.constant 0 : index
    %11 = vector.load %arg8[%c0_16, %c10, %c0_17] : memref<2x12x256xf32, #tpu.memory_space<vmem>>, vector<2x2x256xf32>
    tpu.vector_store %arg8[%c0_16, %c10, %c0_17], %9 {strides = array<i32>} : memref<2x12x256xf32, #tpu.memory_space<vmem>>, vector<2x2x256xf32>,
    %c0_18 = arith.constant 0 : index
    %c2 = arith.constant 2 : index
    %c0_19 = arith.constant 0 : index
    %12 = vector.load %arg8[%c0_18, %c2, %c0_19] : memref<2x12x256xf32, #tpu.memory_space<vmem>>, vector<2x8x256xf32>
    tpu.vector_store %arg8[%c0_18, %c2, %c0_19], %8 {strides = array<i32>} : memref<2x12x256xf32, #tpu.memory_space<vmem>>, vector<2x8x256xf32>,
    %c0_20 = arith.constant 0 : index
    %c0_21 = arith.constant 0 : index
    %c0_22 = arith.constant 0 : index
    %13 = vector.load %arg8[%c0_20, %c0_21, %c0_22] : memref<2x12x256xf32, #tpu.memory_space<vmem>>, vector<2x8x256xf32>
    %c0_23 = arith.constant 0 : index
    %c1_24 = arith.constant 1 : index
    %c0_25 = arith.constant 0 : index
    %14 = vector.load %arg8[%c0_23, %c1_24, %c0_25] : memref<2x12x256xf32, #tpu.memory_space<vmem>>, vector<2x8x256xf32>
    %c0_26 = arith.constant 0 : index
    %c2_27 = arith.constant 2 : index
    %c0_28 = arith.constant 0 : index
    %15 = vector.load %arg8[%c0_26, %c2_27, %c0_28] : memref<2x12x256xf32, #tpu.memory_space<vmem>>, vector<2x8x256xf32>
    %c0_29 = arith.constant 0 : index
    %c3 = arith.constant 3 : index
    %c0_30 = arith.constant 0 : index
    %16 = vector.load %arg8[%c0_29, %c3, %c0_30] : memref<2x12x256xf32, #tpu.memory_space<vmem>>, vector<2x8x256xf32>
    %c0_31 = arith.constant 0 : index
    %c4 = arith.constant 4 : index
    %c0_32 = arith.constant 0 : index
    %17 = vector.load %arg8[%c0_31, %c4, %c0_32] : memref<2x12x256xf32, #tpu.memory_space<vmem>>, vector<2x8x256xf32>
    %18 = tpu.concatenate %13, %14, %15, %16, %17 in 2 : vector<2x8x256xf32>, vector<2x8x256xf32>, vector<2x8x256xf32>, vector<2x8x256xf32>, vector<2x8x256xf32> -> vector<2x8x1280xf32>
    %19 = vector.shape_cast %18 : vector<2x8x1280xf32> to vector<16x1280xf32>
    %c0_33 = arith.constant 0 : index
    %c0_34 = arith.constant 0 : index
    %20 = vector.load %arg4[%c0_33, %c0_34] : memref<1280x256xf32, #tpu.memory_space<vmem>>, vector<1280x256xf32>
    %cst_35 = arith.constant dense<0.000000e+00> : vector<16x256xf32>
    %21 = tpu.matmul %19, %20, %cst_35 {dimension_numbers = #tpu.dot_dimension_numbers<[1], [0], [0], [1], [0, 0, 1, 1], [], []>} : vector<16x1280xf32>, vector<1280x256xf32>, vector<16x256xf32> -> vector<16x256xf32>
    %22 = vector.extract_strided_slice %21 {offsets = [0, 0], sizes = [16, 64], strides = [1, 1]} : vector<16x256xf32> to vector<16x64xf32>
    %23 = vector.extract_strided_slice %21 {offsets = [0, 64], sizes = [16, 64], strides = [1, 1]} : vector<16x256xf32> to vector<16x64xf32>
    %24 = vector.shape_cast %22 : vector<16x64xf32> to vector<2x8x64xf32>
    %cst_36 = arith.constant 0.000000e+00 : f32
    %25 = vector.broadcast %cst_36 : f32 to vector<2x2x64xf32>
    %c0_37 = arith.constant 0 : index
    %c0_38 = arith.constant 0 : index
    %c0_39 = arith.constant 0 : index
    %26 = vector.load %arg9[%c0_37, %c0_38, %c0_39] : memref<2x12x64xf32, #tpu.memory_space<vmem>>, vector<2x2x64xf32>
    tpu.vector_store %arg9[%c0_37, %c0_38, %c0_39], %25 {strides = array<i32>} : memref<2x12x64xf32, #tpu.memory_space<vmem>>, vector<2x2x64xf32>,
    %c0_40 = arith.constant 0 : index
    %c10_41 = arith.constant 10 : index
    %c0_42 = arith.constant 0 : index
    %27 = vector.load %arg9[%c0_40, %c10_41, %c0_42] : memref<2x12x64xf32, #tpu.memory_space<vmem>>, vector<2x2x64xf32>
    tpu.vector_store %arg9[%c0_40, %c10_41, %c0_42], %25 {strides = array<i32>} : memref<2x12x64xf32, #tpu.memory_space<vmem>>, vector<2x2x64xf32>,
    %c0_43 = arith.constant 0 : index
    %c2_44 = arith.constant 2 : index
    %c0_45 = arith.constant 0 : index
    %28 = vector.load %arg9[%c0_43, %c2_44, %c0_45] : memref<2x12x64xf32, #tpu.memory_space<vmem>>, vector<2x8x64xf32>
    tpu.vector_store %arg9[%c0_43, %c2_44, %c0_45], %24 {strides = array<i32>} : memref<2x12x64xf32, #tpu.memory_space<vmem>>, vector<2x8x64xf32>,
    %c0_46 = arith.constant 0 : index
    %c0_47 = arith.constant 0 : index
    %c0_48 = arith.constant 0 : index
    %29 = vector.load %arg9[%c0_46, %c0_47, %c0_48] : memref<2x12x64xf32, #tpu.memory_space<vmem>>, vector<2x8x64xf32>
    %c0_49 = arith.constant 0 : index
    %c1_50 = arith.constant 1 : index
    %c0_51 = arith.constant 0 : index
    %30 = vector.load %arg9[%c0_49, %c1_50, %c0_51] : memref<2x12x64xf32, #tpu.memory_space<vmem>>, vector<2x8x64xf32>
    %c0_52 = arith.constant 0 : index
    %c2_53 = arith.constant 2 : index
    %c0_54 = arith.constant 0 : index
    %31 = vector.load %arg9[%c0_52, %c2_53, %c0_54] : memref<2x12x64xf32, #tpu.memory_space<vmem>>, vector<2x8x64xf32>
    %c0_55 = arith.constant 0 : index
    %c3_56 = arith.constant 3 : index
    %c0_57 = arith.constant 0 : index
    %32 = vector.load %arg9[%c0_55, %c3_56, %c0_57] : memref<2x12x64xf32, #tpu.memory_space<vmem>>, vector<2x8x64xf32>
    %c0_58 = arith.constant 0 : index
    %c4_59 = arith.constant 4 : index
    %c0_60 = arith.constant 0 : index
    %33 = vector.load %arg9[%c0_58, %c4_59, %c0_60] : memref<2x12x64xf32, #tpu.memory_space<vmem>>, vector<2x8x64xf32>
    %34 = tpu.concatenate %29, %30, %31, %32, %33 in 2 : vector<2x8x64xf32>, vector<2x8x64xf32>, vector<2x8x64xf32>, vector<2x8x64xf32>, vector<2x8x64xf32> -> vector<2x8x320xf32>
    %35 = vector.shape_cast %34 : vector<2x8x320xf32> to vector<16x320xf32>
    %c0_61 = arith.constant 0 : index
    %c0_62 = arith.constant 0 : index
    %c0_63 = arith.constant 0 : index
    %36 = vector.load %arg5[%c0_61, %c0_62, %c0_63] : memref<3x320x64xf32, #tpu.memory_space<vmem>>, vector<1x320x64xf32>
    %37 = vector.shape_cast %36 : vector<1x320x64xf32> to vector<320x64xf32>
    %cst_64 = arith.constant dense<0.000000e+00> : vector<16x64xf32>
    %38 = tpu.matmul %35, %37, %cst_64 {dimension_numbers = #tpu.dot_dimension_numbers<[1], [0], [0], [1], [0, 0, 1, 1], [], []>} : vector<16x320xf32>, vector<320x64xf32>, vector<16x64xf32> -> vector<16x64xf32>
    %39 = arith.addf %23, %38 : vector<16x64xf32>
    %40 = vector.extract_strided_slice %21 {offsets = [0, 128], sizes = [16, 64], strides = [1, 1]} : vector<16x256xf32> to vector<16x64xf32>
    %41 = vector.shape_cast %39 : vector<16x64xf32> to vector<2x8x64xf32>
    %cst_65 = arith.constant 0.000000e+00 : f32
    %42 = vector.broadcast %cst_65 : f32 to vector<2x2x64xf32>
    %c0_66 = arith.constant 0 : index
    %c0_67 = arith.constant 0 : index
    %c0_68 = arith.constant 0 : index
    %43 = vector.load %arg9[%c0_66, %c0_67, %c0_68] : memref<2x12x64xf32, #tpu.memory_space<vmem>>, vector<2x2x64xf32>
    tpu.vector_store %arg9[%c0_66, %c0_67, %c0_68], %42 {strides = array<i32>} : memref<2x12x64xf32, #tpu.memory_space<vmem>>, vector<2x2x64xf32>,
    %c0_69 = arith.constant 0 : index
    %c10_70 = arith.constant 10 : index
    %c0_71 = arith.constant 0 : index
    %44 = vector.load %arg9[%c0_69, %c10_70, %c0_71] : memref<2x12x64xf32, #tpu.memory_space<vmem>>, vector<2x2x64xf32>
    tpu.vector_store %arg9[%c0_69, %c10_70, %c0_71], %42 {strides = array<i32>} : memref<2x12x64xf32, #tpu.memory_space<vmem>>, vector<2x2x64xf32>,
    %c0_72 = arith.constant 0 : index
    %c2_73 = arith.constant 2 : index
    %c0_74 = arith.constant 0 : index
    %45 = vector.load %arg9[%c0_72, %c2_73, %c0_74] : memref<2x12x64xf32, #tpu.memory_space<vmem>>, vector<2x8x64xf32>
    tpu.vector_store %arg9[%c0_72, %c2_73, %c0_74], %41 {strides = array<i32>} : memref<2x12x64xf32, #tpu.memory_space<vmem>>, vector<2x8x64xf32>,
    %c0_75 = arith.constant 0 : index
    %c0_76 = arith.constant 0 : index
    %c0_77 = arith.constant 0 : index
    %46 = vector.load %arg9[%c0_75, %c0_76, %c0_77] : memref<2x12x64xf32, #tpu.memory_space<vmem>>, vector<2x8x64xf32>
    %c0_78 = arith.constant 0 : index
    %c1_79 = arith.constant 1 : index
    %c0_80 = arith.constant 0 : index
    %47 = vector.load %arg9[%c0_78, %c1_79, %c0_80] : memref<2x12x64xf32, #tpu.memory_space<vmem>>, vector<2x8x64xf32>
    %c0_81 = arith.constant 0 : index
    %c2_82 = arith.constant 2 : index
    %c0_83 = arith.constant 0 : index
    %48 = vector.load %arg9[%c0_81, %c2_82, %c0_83] : memref<2x12x64xf32, #tpu.memory_space<vmem>>, vector<2x8x64xf32>
    %c0_84 = arith.constant 0 : index
    %c3_85 = arith.constant 3 : index
    %c0_86 = arith.constant 0 : index
    %49 = vector.load %arg9[%c0_84, %c3_85, %c0_86] : memref<2x12x64xf32, #tpu.memory_space<vmem>>, vector<2x8x64xf32>
    %c0_87 = arith.constant 0 : index
    %c4_88 = arith.constant 4 : index
    %c0_89 = arith.constant 0 : index
    %50 = vector.load %arg9[%c0_87, %c4_88, %c0_89] : memref<2x12x64xf32, #tpu.memory_space<vmem>>, vector<2x8x64xf32>
    %51 = tpu.concatenate %46, %47, %48, %49, %50 in 2 : vector<2x8x64xf32>, vector<2x8x64xf32>, vector<2x8x64xf32>, vector<2x8x64xf32>, vector<2x8x64xf32> -> vector<2x8x320xf32>
    %52 = vector.shape_cast %51 : vector<2x8x320xf32> to vector<16x320xf32>
    %c1_90 = arith.constant 1 : index
    %c0_91 = arith.constant 0 : index
    %c0_92 = arith.constant 0 : index
    %53 = vector.load %arg5[%c1_90, %c0_91, %c0_92] : memref<3x320x64xf32, #tpu.memory_space<vmem>>, vector<1x320x64xf32>
    %54 = vector.shape_cast %53 : vector<1x320x64xf32> to vector<320x64xf32>
    %cst_93 = arith.constant dense<0.000000e+00> : vector<16x64xf32>
    %55 = tpu.matmul %52, %54, %cst_93 {dimension_numbers = #tpu.dot_dimension_numbers<[1], [0], [0], [1], [0, 0, 1, 1], [], []>} : vector<16x320xf32>, vector<320x64xf32>, vector<16x64xf32> -> vector<16x64xf32>
    %56 = arith.addf %40, %55 : vector<16x64xf32>
    %57 = vector.extract_strided_slice %21 {offsets = [0, 192], sizes = [16, 64], strides = [1, 1]} : vector<16x256xf32> to vector<16x64xf32>
    %58 = vector.shape_cast %56 : vector<16x64xf32> to vector<2x8x64xf32>
    %cst_94 = arith.constant 0.000000e+00 : f32
    %59 = vector.broadcast %cst_94 : f32 to vector<2x2x64xf32>
    %c0_95 = arith.constant 0 : index
    %c0_96 = arith.constant 0 : index
    %c0_97 = arith.constant 0 : index
    %60 = vector.load %arg9[%c0_95, %c0_96, %c0_97] : memref<2x12x64xf32, #tpu.memory_space<vmem>>, vector<2x2x64xf32>
    tpu.vector_store %arg9[%c0_95, %c0_96, %c0_97], %59 {strides = array<i32>} : memref<2x12x64xf32, #tpu.memory_space<vmem>>, vector<2x2x64xf32>,
    %c0_98 = arith.constant 0 : index
    %c10_99 = arith.constant 10 : index
    %c0_100 = arith.constant 0 : index
    %61 = vector.load %arg9[%c0_98, %c10_99, %c0_100] : memref<2x12x64xf32, #tpu.memory_space<vmem>>, vector<2x2x64xf32>
    tpu.vector_store %arg9[%c0_98, %c10_99, %c0_100], %59 {strides = array<i32>} : memref<2x12x64xf32, #tpu.memory_space<vmem>>, vector<2x2x64xf32>,
    %c0_101 = arith.constant 0 : index
    %c2_102 = arith.constant 2 : index
    %c0_103 = arith.constant 0 : index
    %62 = vector.load %arg9[%c0_101, %c2_102, %c0_103] : memref<2x12x64xf32, #tpu.memory_space<vmem>>, vector<2x8x64xf32>
    tpu.vector_store %arg9[%c0_101, %c2_102, %c0_103], %58 {strides = array<i32>} : memref<2x12x64xf32, #tpu.memory_space<vmem>>, vector<2x8x64xf32>,
    %c0_104 = arith.constant 0 : index
    %c0_105 = arith.constant 0 : index
    %c0_106 = arith.constant 0 : index
    %63 = vector.load %arg9[%c0_104, %c0_105, %c0_106] : memref<2x12x64xf32, #tpu.memory_space<vmem>>, vector<2x8x64xf32>
    %c0_107 = arith.constant 0 : index
    %c1_108 = arith.constant 1 : index
    %c0_109 = arith.constant 0 : index
    %64 = vector.load %arg9[%c0_107, %c1_108, %c0_109] : memref<2x12x64xf32, #tpu.memory_space<vmem>>, vector<2x8x64xf32>
    %c0_110 = arith.constant 0 : index
    %c2_111 = arith.constant 2 : index
    %c0_112 = arith.constant 0 : index
    %65 = vector.load %arg9[%c0_110, %c2_111, %c0_112] : memref<2x12x64xf32, #tpu.memory_space<vmem>>, vector<2x8x64xf32>
    %c0_113 = arith.constant 0 : index
    %c3_114 = arith.constant 3 : index
    %c0_115 = arith.constant 0 : index
    %66 = vector.load %arg9[%c0_113, %c3_114, %c0_115] : memref<2x12x64xf32, #tpu.memory_space<vmem>>, vector<2x8x64xf32>
    %c0_116 = arith.constant 0 : index
    %c4_117 = arith.constant 4 : index
    %c0_118 = arith.constant 0 : index
    %67 = vector.load %arg9[%c0_116, %c4_117, %c0_118] : memref<2x12x64xf32, #tpu.memory_space<vmem>>, vector<2x8x64xf32>
    %68 = tpu.concatenate %63, %64, %65, %66, %67 in 2 : vector<2x8x64xf32>, vector<2x8x64xf32>, vector<2x8x64xf32>, vector<2x8x64xf32>, vector<2x8x64xf32> -> vector<2x8x320xf32>
    %69 = vector.shape_cast %68 : vector<2x8x320xf32> to vector<16x320xf32>
    %c2_119 = arith.constant 2 : index
    %c0_120 = arith.constant 0 : index
    %c0_121 = arith.constant 0 : index
    %70 = vector.load %arg5[%c2_119, %c0_120, %c0_121] : memref<3x320x64xf32, #tpu.memory_space<vmem>>, vector<1x320x64xf32>
    %71 = vector.shape_cast %70 : vector<1x320x64xf32> to vector<320x64xf32>
    %cst_122 = arith.constant dense<0.000000e+00> : vector<16x64xf32>
    %72 = tpu.matmul %69, %71, %cst_122 {dimension_numbers = #tpu.dot_dimension_numbers<[1], [0], [0], [1], [0, 0, 1, 1], [], []>} : vector<16x320xf32>, vector<320x64xf32>, vector<16x64xf32> -> vector<16x64xf32>
    %73 = arith.addf %57, %72 : vector<16x64xf32>
    %74 = tpu.concatenate %22, %39, %56, %73 in 1 : vector<16x64xf32>, vector<16x64xf32>, vector<16x64xf32>, vector<16x64xf32> -> vector<16x256xf32>
    %75 = vector.shape_cast %74 : vector<16x256xf32> to vector<2x8x256xf32>
    %c0_123 = arith.constant 0 : index
    %c0_124 = arith.constant 0 : index
    %c0_125 = arith.constant 0 : index
    %76 = vector.load %arg6[%c0_123, %c0_124, %c0_125] : memref<2x8x256xf32, #tpu.memory_space<vmem>>, vector<2x8x256xf32>
    tpu.vector_store %arg6[%c0_123, %c0_124, %c0_125], %75 {strides = array<i32>} : memref<2x8x256xf32, #tpu.memory_space<vmem>>, vector<2x8x256xf32>,
    %cst_126 = arith.constant dense<0.000000e+00> : vector<256xf32>
    %77 = vector.multi_reduction <add>, %74, %cst_126 [0] : vector<16x256xf32> to vector<256xf32>
    %78 = vector.shape_cast %77 : vector<256xf32> to vector<1x256xf32>
    %79 = arith.mulf %74, %74 : vector<16x256xf32>
    %cst_127 = arith.constant dense<0.000000e+00> : vector<256xf32>
    %80 = vector.multi_reduction <add>, %79, %cst_127 [0] : vector<16x256xf32> to vector<256xf32>
    %81 = vector.shape_cast %80 : vector<256xf32> to vector<1x256xf32>
    %82 = tpu.concatenate %78, %81 in 0 : vector<1x256xf32>, vector<1x256xf32> -> vector<2x256xf32>
    %c0_128 = arith.constant 0 : index
    %c0_129 = arith.constant 0 : index
    %c0_130 = arith.constant 0 : index
    %83 = vector.load %arg7[%c0_128, %c0_129, %c0_130] : memref<1x2x256xf32, #tpu.memory_space<vmem>>, vector<1x2x256xf32>
    %84 = vector.shape_cast %83 : vector<1x2x256xf32> to vector<2x256xf32>
    %85 = vector.shape_cast %82 : vector<2x256xf32> to vector<1x2x256xf32>
    tpu.vector_store %arg7[%c0_128, %c0_129, %c0_130], %85 {strides = array<i32>} : memref<1x2x256xf32, #tpu.memory_space<vmem>>, vector<1x2x256xf32>,
    return
  }
  func.func @transform_0(%arg0: i32) -> (i32, i32, i32) {
    %c0_i32 = arith.constant 0 : i32
    %c0_i32_0 = arith.constant 0 : i32
    %c0_i32_1 = arith.constant 0 : i32
    return %arg0, %c0_i32, %c0_i32_0 : i32, i32, i32
  }
  func.func @transform_1(%arg0: i32) -> (i32, i32, i32) {
    %c0_i32 = arith.constant 0 : i32
    %c0_i32_0 = arith.constant 0 : i32
    %c0_i32_1 = arith.constant 0 : i32
    return %arg0, %c0_i32, %c0_i32_0 : i32, i32, i32
  }
  func.func @transform_2(%arg0: i32) -> (i32, i32) {
    %c0_i32 = arith.constant 0 : i32
    %c0_i32_0 = arith.constant 0 : i32
    %c0_i32_1 = arith.constant 0 : i32
    return %c0_i32, %c0_i32_0 : i32, i32
  }
  func.func @transform_3(%arg0: i32) -> (i32, i32) {
    %c0_i32 = arith.constant 0 : i32
    %c0_i32_0 = arith.constant 0 : i32
    %c0_i32_1 = arith.constant 0 : i32
    return %c0_i32, %c0_i32_0 : i32, i32
  }
  func.func @transform_4(%arg0: i32) -> (i32, i32, i32) {
    %c0_i32 = arith.constant 0 : i32
    %c0_i32_0 = arith.constant 0 : i32
    %c0_i32_1 = arith.constant 0 : i32
    %c0_i32_2 = arith.constant 0 : i32
    return %c0_i32, %c0_i32_0, %c0_i32_1 : i32, i32, i32
  }
  func.func @transform_5(%arg0: i32) -> (i32, i32, i32) {
    %c0_i32 = arith.constant 0 : i32
    %c0_i32_0 = arith.constant 0 : i32
    %c0_i32_1 = arith.constant 0 : i32
    return %arg0, %c0_i32, %c0_i32_0 : i32, i32, i32
  }
  func.func @transform_6(%arg0: i32) -> (i32, i32, i32) {
    %c0_i32 = arith.constant 0 : i32
    %c0_i32_0 = arith.constant 0 : i32
    %c0_i32_1 = arith.constant 0 : i32
    return %arg0, %c0_i32, %c0_i32_0 : i32, i32, i32
  }
}

</mosaic_0001>

<bundles_post_ra>
// kernel: tpu_custom_call.1
= control target key start
LH: loop header
LB: loop body
LE: loop exit
PB: predicated region body
PF: predicated region fallthrough
CT: control target
= control target key end

     0   :  { %12 = vsyncpa [#allocation5], 0  ;;  %s3158_s0 = inlined_call_operand.vmem [shape: f32[2,9,128], index: 0, kind: input, shape index: {}]   ;;  %s3159_s1 = inlined_call_operand.vmem [shape: f32[2,9,128], index: 1, kind: input, shape index: {}]   ;;  %s3160_s2 = inlined_call_operand.vmem [shape: f32[512,256], index: 2, kind: input, shape index: {}]   ;;  %s3161_s3 = inlined_call_operand.hbm [shape: f32[1280,256], index: 3, kind: input, shape index: {}]   ;;  %s3162_s4 = inlined_call_operand.vmem [shape: f32[3,320,64], index: 4, kind: input, shape index: {}]   ;;  %s3163_s5 = inlined_call_operand.hbm [shape: f32[2,8,256], index: 5, kind: output, shape index: {0}]   ;;  %s3164_s6 = inlined_call_operand.hbm [shape: f32[1,2,256], index: 6, kind: output, shape index: {1}]  }
   0x1   :  { %13 = vsyncpa [#allocation6], 0 }
   0x2   :  { %14 = vsyncpa [#allocation9], 0  ;;  %s25_s23 = sshll.u32 %s3161_s3, 4  ;;  %s2080_s24 = smov [#allocation4]   ;;  %s26_s23 = int_to_ptr.hbm [resolvable:$true] %s25_s23 }
   0x3   :  { %s27_s25 = sshll.u32 %s2080_s24, 4  ;;  %s2081_s26 = smov 256   ;;  %s28_s25 = int_to_ptr.vmem [resolvable:$true] %s27_s25 }
   0x4   :  { %s2082_s27 = smov 16  }
   0x5   :  { %33 = dma.hbm_to_vmem [thread:$0]  %s26_s23, 40960, %s28_s25, [#allocation5], %s2081_s26, %s2081_s26, %s2082_s27  }
   0x6   :  { %2074 = dma.done.wait [#allocation5], 40960  }
   0x7   :  { %2075 = vsyncadd [#allocation5], 4294926336  ;;  %v142_v0 = vld [vmem:[%s3160_s2 + $0x2f0] sm:$0xff]  ;;  %v140_v1 = vld [vmem:[%s3160_s2 + $0x2e0] sm:$0xff]  ;;  %vm432_vm0 = vcmask 1046528   ;;  %vm457_vm1 = vcmask 1045504  }
   0x8   :  { %v174_v2 = vld [vmem:[%s3160_s2 + $0x3f0] sm:$0xff]  ;;  %222 = vmatpush.msra.mxu2 %v142_v0  ;;  %v172_v6 = vld [vmem:[%s3160_s2 + $0x3e0] sm:$0xff]  ;;  %v143_v0 = vld [vmem:[%s3160_s2 + $0x2f8] sm:$0xff]  ;;  %vm482_vm2 = vcmask 1044480   ;;  %vm507_vm3 = vcmask 1043456   ;;  %vm1304_vm4 = vcmask 517120  }
   0x9   :  { %245 = vmatpush.msra.mxu3 %v174_v2  ;;  %v78_v3 = vld [vmem:[%s3160_s2 + $0xf0] sm:$0xff]  ;;  %v76_v7 = vld [vmem:[%s3160_s2 + $0xe0] sm:$0xff]  ;;  %vm1309_vm5 = vcmask 523264   ;;  %s2084_s30 = smov 64   ;;  %vm1831_vm6 = vcmask 1040384   ;;  %s1847_s3 = sshll.u32 %s3163_s5, 4  ;;  %s1848_s3 = int_to_ptr.hbm [resolvable:$true] %s1847_s3 }
   0xa   :  { %v110_v4 = vld [vmem:[%s3160_s2 + $0x1f0] sm:$0xff]  ;;  %176 = vmatpush.msra.mxu0 %v78_v3  ;;  %v108_v8 = vld [vmem:[%s3160_s2 + $0x1e0] sm:$0xff]  ;;  %223 = vmatpush.msra.mxu2 %v140_v1  ;;  %v175_v1 = vld [vmem:[%s3160_s2 + $0x3f8] sm:$0xff]  ;;  %s2086_s5 = smov [#allocation8]   ;;  %s1861_s10 = sshll.u32 %s3164_s6, 4  ;;  %vm1837_vm7 = vcmask 1041408   ;;  %s1862_s10 = int_to_ptr.hbm [resolvable:$true] %s1861_s10 }
   0xb   :  { %v138_v5 = vld [vmem:[%s3160_s2 + $0x2d0] sm:$0xff]  ;;  %199 = vmatpush.msra.mxu1 %v110_v4  ;;  %246 = vmatpush.msra.mxu3 %v172_v6  ;;  %v136_v11 = vld [vmem:[%s3160_s2 + $0x2c0] sm:$0xff]  ;;  %v141_v4 = vld [vmem:[%s3160_s2 + $0x2e8] sm:$0xff] }
   0xc   :  { %v170_v9 = vld [vmem:[%s3160_s2 + $0x3d0] sm:$0xff]  ;;  %177 = vmatpush.msra.mxu0 %v76_v7  ;;  %v168_v13 = vld [vmem:[%s3160_s2 + $0x3c0] sm:$0xff]  ;;  %224 = vmatpush.msra.mxu2 %v138_v5  ;;  %v79_v7 = vld [vmem:[%s3160_s2 + $0xf8] sm:$0xff] }
   0xd   :  { %v74_v10 = vld [vmem:[%s3160_s2 + $0xd0] sm:$0xff]  ;;  %200 = vmatpush.msra.mxu1 %v108_v8  ;;  %247 = vmatpush.msra.mxu3 %v170_v9  ;;  %v72_v14 = vld [vmem:[%s3160_s2 + $0xc0] sm:$0xff]  ;;  %v111_v8 = vld [vmem:[%s3160_s2 + $0x1f8] sm:$0xff] }
   0xe   :  { %v106_v12 = vld [vmem:[%s3160_s2 + $0x1d0] sm:$0xff]  ;;  %v104_v15 = vld [vmem:[%s3160_s2 + $0x1c0] sm:$0xff]  ;;  %178 = vmatpush.msra.mxu0 %v74_v10  ;;  %225 = vmatpush.msra.mxu2 %v136_v11  ;;  %v139_v9 = vld [vmem:[%s3160_s2 + $0x2d8] sm:$0xff] }
   0xf   :  { %201 = vmatpush.msra.mxu1 %v106_v12  ;;  %v134_v16 = vld [vmem:[%s3160_s2 + $0x2b0] sm:$0xff]  ;;  %248 = vmatpush.msra.mxu3 %v168_v13  ;;  %v132_v20 = vld [vmem:[%s3160_s2 + $0x2a0] sm:$0xff]  ;;  %v173_v10 = vld [vmem:[%s3160_s2 + $0x3e8] sm:$0xff] }
  0x10   :  { %v166_v17 = vld [vmem:[%s3160_s2 + $0x3b0] sm:$0xff]  ;;  %179 = vmatpush.msra.mxu0 %v72_v14  ;;  %v164_v21 = vld [vmem:[%s3160_s2 + $0x3a0] sm:$0xff]  ;;  %226 = vmatpush.msra.mxu2 %v134_v16  ;;  %v77_v11 = vld [vmem:[%s3160_s2 + $0xe8] sm:$0xff] }
  0x11   :  { %v70_v18 = vld [vmem:[%s3160_s2 + $0xb0] sm:$0xff]  ;;  %202 = vmatpush.msra.mxu1 %v104_v15  ;;  %249 = vmatpush.msra.mxu3 %v166_v17  ;;  %v68_v22 = vld [vmem:[%s3160_s2 + $0xa0] sm:$0xff]  ;;  %v109_v12 = vld [vmem:[%s3160_s2 + $0x1e8] sm:$0xff] }
  0x12   :  { %v102_v19 = vld [vmem:[%s3160_s2 + $0x1b0] sm:$0xff]  ;;  %v100_v23 = vld [vmem:[%s3160_s2 + $0x1a0] sm:$0xff]  ;;  %180 = vmatpush.msra.mxu0 %v70_v18  ;;  %227 = vmatpush.msra.mxu2 %v132_v20  ;;  %v137_v13 = vld [vmem:[%s3160_s2 + $0x2c8] sm:$0xff] }
  0x13   :  { %203 = vmatpush.msra.mxu1 %v102_v19  ;;  %v130_v24 = vld [vmem:[%s3160_s2 + $0x290] sm:$0xff]  ;;  %250 = vmatpush.msra.mxu3 %v164_v21  ;;  %v128_v28 = vld [vmem:[%s3160_s2 + $0x280] sm:$0xff]  ;;  %v171_v14 = vld [vmem:[%s3160_s2 + $0x3d8] sm:$0xff] }
  0x14   :  { %v162_v25 = vld [vmem:[%s3160_s2 + $0x390] sm:$0xff]  ;;  %181 = vmatpush.msra.mxu0 %v68_v22  ;;  %v160_v29 = vld [vmem:[%s3160_s2 + $0x380] sm:$0xff]  ;;  %228 = vmatpush.msra.mxu2 %v130_v24  ;;  %v75_v16 = vld [vmem:[%s3160_s2 + $0xd8] sm:$0xff] }
  0x15   :  { %v66_v26 = vld [vmem:[%s3160_s2 + $0x90] sm:$0xff]  ;;  %204 = vmatpush.msra.mxu1 %v100_v23  ;;  %251 = vmatpush.msra.mxu3 %v162_v25  ;;  %v64_v30 = vld [vmem:[%s3160_s2 + $0x80] sm:$0xff]  ;;  %v107_v17 = vld [vmem:[%s3160_s2 + $0x1d8] sm:$0xff] }
  0x16   :  { %v98_v27 = vld [vmem:[%s3160_s2 + $0x190] sm:$0xff]  ;;  %v96_v31 = vld [vmem:[%s3160_s2 + $0x180] sm:$0xff]  ;;  %182 = vmatpush.msra.mxu0 %v66_v26  ;;  %229 = vmatpush.msra.mxu2 %v128_v28  ;;  %v135_v18 = vld [vmem:[%s3160_s2 + $0x2b8] sm:$0xff] }
  0x17   :  { %205 = vmatpush.msra.mxu1 %v98_v27  ;;  %v126_v32 = vld [vmem:[%s3160_s2 + $0x270] sm:$0xff]  ;;  %252 = vmatpush.msra.mxu3 %v160_v29  ;;  %v124_v36 = vld [vmem:[%s3160_s2 + $0x260] sm:$0xff]  ;;  %v169_v19 = vld [vmem:[%s3160_s2 + $0x3c8] sm:$0xff] }
  0x18   :  { %v158_v33 = vld [vmem:[%s3160_s2 + $0x370] sm:$0xff]  ;;  %183 = vmatpush.msra.mxu0 %v64_v30  ;;  %v156_v37 = vld [vmem:[%s3160_s2 + $0x360] sm:$0xff]  ;;  %230 = vmatpush.msra.mxu2 %v126_v32  ;;  %v73_v21 = vld [vmem:[%s3160_s2 + $0xc8] sm:$0xff] }
  0x19   :  { %v62_v34 = vld [vmem:[%s3160_s2 + $0x70] sm:$0xff]  ;;  %206 = vmatpush.msra.mxu1 %v96_v31  ;;  %253 = vmatpush.msra.mxu3 %v158_v33  ;;  %v60_v38 = vld [vmem:[%s3160_s2 + $0x60] sm:$0xff]  ;;  %v105_v22 = vld [vmem:[%s3160_s2 + $0x1c8] sm:$0xff] }
  0x1a   :  { %v94_v35 = vld [vmem:[%s3160_s2 + $0x170] sm:$0xff]  ;;  %v92_v39 = vld [vmem:[%s3160_s2 + $0x160] sm:$0xff]  ;;  %184 = vmatpush.msra.mxu0 %v62_v34  ;;  %231 = vmatpush.msra.mxu2 %v124_v36  ;;  %v133_v23 = vld [vmem:[%s3160_s2 + $0x2a8] sm:$0xff] }
  0x1b   :  { %207 = vmatpush.msra.mxu1 %v94_v35  ;;  %v122_v40 = vld [vmem:[%s3160_s2 + $0x250] sm:$0xff]  ;;  %254 = vmatpush.msra.mxu3 %v156_v37  ;;  %v120_v44 = vld [vmem:[%s3160_s2 + $0x240] sm:$0xff]  ;;  %v167_v24 = vld [vmem:[%s3160_s2 + $0x3b8] sm:$0xff] }
  0x1c   :  { %v154_v41 = vld [vmem:[%s3160_s2 + $0x350] sm:$0xff]  ;;  %185 = vmatpush.msra.mxu0 %v60_v38  ;;  %v152_v45 = vld [vmem:[%s3160_s2 + $0x340] sm:$0xff]  ;;  %232 = vmatpush.msra.mxu2 %v122_v40  ;;  %v71_v27 = vld [vmem:[%s3160_s2 + $0xb8] sm:$0xff] }
  0x1d   :  { %v58_v42 = vld [vmem:[%s3160_s2 + $0x50] sm:$0xff]  ;;  %208 = vmatpush.msra.mxu1 %v92_v39  ;;  %255 = vmatpush.msra.mxu3 %v154_v41  ;;  %v56_v46 = vld [vmem:[%s3160_s2 + $0x40] sm:$0xff]  ;;  %v103_v28 = vld [vmem:[%s3160_s2 + $0x1b8] sm:$0xff] }
  0x1e   :  { %v90_v43 = vld [vmem:[%s3160_s2 + $0x150] sm:$0xff]  ;;  %v88_v47 = vld [vmem:[%s3160_s2 + $0x140] sm:$0xff]  ;;  %186 = vmatpush.msra.mxu0 %v58_v42  ;;  %233 = vmatpush.msra.mxu2 %v120_v44  ;;  %v131_v29 = vld [vmem:[%s3160_s2 + $0x298] sm:$0xff] }
  0x1f   :  { %209 = vmatpush.msra.mxu1 %v90_v43  ;;  %v118_v48 = vld [vmem:[%s3160_s2 + $0x230] sm:$0xff]  ;;  %256 = vmatpush.msra.mxu3 %v152_v45  ;;  %v116_v52 = vld [vmem:[%s3160_s2 + $0x220] sm:$0xff]  ;;  %v165_v30 = vld [vmem:[%s3160_s2 + $0x3a8] sm:$0xff] }
  0x20   :  { %v150_v49 = vld [vmem:[%s3160_s2 + $0x330] sm:$0xff]  ;;  %187 = vmatpush.msra.mxu0 %v56_v46  ;;  %v148_v53 = vld [vmem:[%s3160_s2 + $0x320] sm:$0xff]  ;;  %234 = vmatpush.msra.mxu2 %v118_v48  ;;  %v69_v31 = vld [vmem:[%s3160_s2 + $0xa8] sm:$0xff] }
  0x21   :  { %v54_v50 = vld [vmem:[%s3160_s2 + $0x30] sm:$0xff]  ;;  %210 = vmatpush.msra.mxu1 %v88_v47  ;;  %257 = vmatpush.msra.mxu3 %v150_v49  ;;  %v52_v54 = vld [vmem:[%s3160_s2 + $0x20] sm:$0xff]  ;;  %v101_v32 = vld [vmem:[%s3160_s2 + $0x1a8] sm:$0xff] }
  0x22   :  { %v86_v51 = vld [vmem:[%s3160_s2 + $0x130] sm:$0xff]  ;;  %v84_v55 = vld [vmem:[%s3160_s2 + $0x120] sm:$0xff]  ;;  %188 = vmatpush.msra.mxu0 %v54_v50  ;;  %235 = vmatpush.msra.mxu2 %v116_v52  ;;  %v129_v33 = vld [vmem:[%s3160_s2 + $0x288] sm:$0xff] }
  0x23   :  { %211 = vmatpush.msra.mxu1 %v86_v51  ;;  %v114_v56 = vld [vmem:[%s3160_s2 + $0x210] sm:$0xff]  ;;  %258 = vmatpush.msra.mxu3 %v148_v53  ;;  %v112_v60 = vld [vmem:[%s3160_s2 + $0x200] sm:$0xff]  ;;  %v163_v34 = vld [vmem:[%s3160_s2 + $0x398] sm:$0xff] }
  0x24   :  { %v146_v57 = vld [vmem:[%s3160_s2 + $0x310] sm:$0xff]  ;;  %189 = vmatpush.msra.mxu0 %v52_v54  ;;  %v144_v61 = vld [vmem:[%s3160_s2 + $0x300] sm:$0xff]  ;;  %236 = vmatpush.msra.mxu2 %v114_v56  ;;  %v67_v35 = vld [vmem:[%s3160_s2 + $0x98] sm:$0xff] }
  0x25   :  { %v50_v58 = vld [vmem:[%s3160_s2 + $0x10] sm:$0xff]  ;;  %212 = vmatpush.msra.mxu1 %v84_v55  ;;  %259 = vmatpush.msra.mxu3 %v146_v57  ;;  %v2317_v62 = vld [vmem:[%s3158_s0 + $0x1] sm:$0xff]  ;;  %v99_v36 = vld [vmem:[%s3160_s2 + $0x198] sm:$0xff] }
  0x26   :  { %v82_v59 = vld [vmem:[%s3160_s2 + $0x110] sm:$0xff]  ;;  %v2322_v63 = vld [vmem:[%s3159_s1 + $0x1] sm:$0xff]  ;;  %190 = vmatpush.msra.mxu0 %v50_v58  ;;  %237 = vmatpush.msra.mxu2 %v112_v60  ;;  %v127_v37 = vld [vmem:[%s3160_s2 + $0x278] sm:$0xff] }
  0x27   :  { %213 = vmatpush.msra.mxu1 %v82_v59  ;;  %260 = vmatpush.msra.mxu3 %v144_v61  ;;  %v48_v2 = vld [vmem:[%s3160_s2] sm:$0xff]  ;;  %v2380_v15 = vld [vmem:[%s3158_s0 + $0x11] sm:$0xff]  ;;  %v161_v38 = vld [vmem:[%s3160_s2 + $0x388] sm:$0xff] }
  0x28   :  { %v80_v3 = vld [vmem:[%s3160_s2 + $0x100] sm:$0xff]  ;;  %238 = vmatmul.f32.vlgmr.msra.gmra.mxu2 %v2317_v62  ;;  %261 = vmatmul.f32.vlgmr.msra.gmra.mxu3 %v2322_v63  ;;  %v2398_v20 = vld [vmem:[%s3159_s1 + $0x11] sm:$0xff]  ;;  %v65_v39 = vld [vmem:[%s3160_s2 + $0x88] sm:$0xff] }
  0x29   :  { %v2344_v5 = vld [vmem:[%s3158_s0] sm:$0xff]  ;;  %314 = vmatpush.msrb.mxu2 %v143_v0  ;;  %337 = vmatpush.msrb.mxu3 %v175_v1  ;;  %v2415_v25 = vld [vmem:[%s3158_s0 + $0x10] sm:$0xff]  ;;  %v97_v40 = vld [vmem:[%s3160_s2 + $0x188] sm:$0xff] }
  0x2a   :  { %v2349_v6 = vld [vmem:[%s3159_s1] sm:$0xff]  ;;  %191 = vmatpush.msra.mxu0 %v48_v2  ;;  %214 = vmatpush.msra.mxu1 %v80_v3  ;;  %v2421_v26 = vld [vmem:[%s3159_s1 + $0x10] sm:$0xff]  ;;  %v125_v41 = vld [vmem:[%s3160_s2 + $0x268] sm:$0xff] }
  0x2b   :  { %315 = vmatpush.msrb.mxu2 %v141_v4  ;;  %192 = vmatmul.f32.vlgmr.msra.gmra.mxu0 %v2344_v5  ;;  %v159_v42 = vld [vmem:[%s3160_s2 + $0x378] sm:$0xff]  ;;  %v157_v46 = vld [vmem:[%s3160_s2 + $0x368] sm:$0xff] }
  0x2c   :  { %215 = vmatmul.f32.vlgmr.msra.gmra.mxu1 %v2349_v6  ;;  %268 = vmatpush.msrb.mxu0 %v79_v7  ;;  %v63_v43 = vld [vmem:[%s3160_s2 + $0x78] sm:$0xff]  ;;  %v61_v47 = vld [vmem:[%s3160_s2 + $0x68] sm:$0xff] }
  0x2d   :  { %291 = vmatpush.msrb.mxu1 %v111_v8  ;;  %316 = vmatpush.msrb.mxu2 %v139_v9  ;;  %v95_v44 = vld [vmem:[%s3160_s2 + $0x178] sm:$0xff]  ;;  %v93_v48 = vld [vmem:[%s3160_s2 + $0x168] sm:$0xff] }
  0x2e   :  { %338 = vmatpush.msrb.mxu3 %v173_v10  ;;  %269 = vmatpush.msrb.mxu0 %v77_v11  ;;  %v123_v45 = vld [vmem:[%s3160_s2 + $0x258] sm:$0xff]  ;;  %v121_v49 = vld [vmem:[%s3160_s2 + $0x248] sm:$0xff]  ;;  %v618_v10 = vld [vmem:[#allocation4 + $0x2f0] sm:$0xff] }
  0x2f   :  { %292 = vmatpush.msrb.mxu1 %v109_v12  ;;  %317 = vmatpush.msrb.mxu2 %v137_v13  ;;  %v155_v50 = vld [vmem:[%s3160_s2 + $0x358] sm:$0xff]  ;;  %v153_v54 = vld [vmem:[%s3160_s2 + $0x348] sm:$0xff]  ;;  %v554_v13 = vld [vmem:[#allocation4 + $0xf0] sm:$0xff] }
  0x30   :  { %339 = vmatpush.msrb.mxu3 %v171_v14  ;;  %241 = vmatmul.f32.gmra.mxu2 %v2380_v15  ;;  %v59_v51 = vld [vmem:[%s3160_s2 + $0x58] sm:$0xff]  ;;  %v57_v55 = vld [vmem:[%s3160_s2 + $0x48] sm:$0xff]  ;;  %v616_v14 = vld [vmem:[#allocation4 + $0x2e0] sm:$0xff] }
  0x31   :  { %270 = vmatpush.msrb.mxu0 %v75_v16  ;;  %293 = vmatpush.msrb.mxu1 %v107_v17  ;;  %v91_v52 = vld [vmem:[%s3160_s2 + $0x158] sm:$0xff]  ;;  %v89_v56 = vld [vmem:[%s3160_s2 + $0x148] sm:$0xff]  ;;  %v586_v16 = vld [vmem:[#allocation4 + $0x1f0] sm:$0xff] }
  0x32   :  { %318 = vmatpush.msrb.mxu2 %v135_v18  ;;  %340 = vmatpush.msrb.mxu3 %v169_v19  ;;  %v119_v53 = vld [vmem:[%s3160_s2 + $0x238] sm:$0xff]  ;;  %v117_v57 = vld [vmem:[%s3160_s2 + $0x228] sm:$0xff]  ;;  %v584_v17 = vld [vmem:[#allocation4 + $0x1e0] sm:$0xff] }
  0x33   :  { %264 = vmatmul.f32.gmra.mxu3 %v2398_v20  ;;  %271 = vmatpush.msrb.mxu0 %v73_v21  ;;  %v151_v58 = vld [vmem:[%s3160_s2 + $0x338] sm:$0xff]  ;;  %v149_v0 = vld [vmem:[%s3160_s2 + $0x328] sm:$0xff]  ;;  %v550_v18 = vld [vmem:[#allocation4 + $0xd0] sm:$0xff] }
  0x34   :  { %294 = vmatpush.msrb.mxu1 %v105_v22  ;;  %319 = vmatpush.msrb.mxu2 %v133_v23  ;;  %v55_v59 = vld [vmem:[%s3160_s2 + $0x38] sm:$0xff]  ;;  %v53_v1 = vld [vmem:[%s3160_s2 + $0x28] sm:$0xff]  ;;  %v614_v19 = vld [vmem:[#allocation4 + $0x2d0] sm:$0xff] }
  0x35   :  { %341 = vmatpush.msrb.mxu3 %v167_v24  ;;  %195 = vmatmul.f32.gmra.mxu0 %v2415_v25  ;;  %v87_v60 = vld [vmem:[%s3160_s2 + $0x138] sm:$0xff]  ;;  %v85_v2 = vld [vmem:[%s3160_s2 + $0x128] sm:$0xff]  ;;  %v650_v21 = vld [vmem:[#allocation4 + $0x3f0] sm:$0xff] }
  0x36   :  { %218 = vmatmul.f32.gmra.mxu1 %v2421_v26  ;;  %272 = vmatpush.msrb.mxu0 %v71_v27  ;;  %v115_v61 = vld [vmem:[%s3160_s2 + $0x218] sm:$0xff]  ;;  %v113_v3 = vld [vmem:[%s3160_s2 + $0x208] sm:$0xff]  ;;  %v582_v22 = vld [vmem:[#allocation4 + $0x1d0] sm:$0xff] }
  0x37   :  { %295 = vmatpush.msrb.mxu1 %v103_v28  ;;  %320 = vmatpush.msrb.mxu2 %v131_v29  ;;  %v147_v4 = vld [vmem:[%s3160_s2 + $0x318] sm:$0xff]  ;;  %v145_v9 = vld [vmem:[%s3160_s2 + $0x308] sm:$0xff]  ;;  %v648_v23 = vld [vmem:[#allocation4 + $0x3e0] sm:$0xff] }
  0x38   :  { %342 = vmatpush.msrb.mxu3 %v165_v30  ;;  %273 = vmatpush.msrb.mxu0 %v69_v31  ;;  %v51_v7 = vld [vmem:[%s3160_s2 + $0x18] sm:$0xff]  ;;  %v49_v11 = vld [vmem:[%s3160_s2 + $0x8] sm:$0xff]  ;;  %v546_v24 = vld [vmem:[#allocation4 + $0xb0] sm:$0xff] }
  0x39   :  { %296 = vmatpush.msrb.mxu1 %v101_v32  ;;  %321 = vmatpush.msrb.mxu2 %v129_v33  ;;  %v83_v8 = vld [vmem:[%s3160_s2 + $0x118] sm:$0xff]  ;;  %v81_v12 = vld [vmem:[%s3160_s2 + $0x108] sm:$0xff]  ;;  %v580_v27 = vld [vmem:[#allocation4 + $0x1c0] sm:$0xff] }
  0x3a   :  { %343 = vmatpush.msrb.mxu3 %v163_v34  ;;  %274 = vmatpush.msrb.mxu0 %v67_v35  ;;  %v544_v28 = vld [vmem:[#allocation4 + $0xa0] sm:$0xff]  ;;  %v646_v29 = vld [vmem:[#allocation4 + $0x3d0] sm:$0xff] }
  0x3b   :  { %297 = vmatpush.msrb.mxu1 %v99_v36  ;;  %322 = vmatpush.msrb.mxu2 %v127_v37  ;;  %v578_v30 = vld [vmem:[#allocation4 + $0x1b0] sm:$0xff]  ;;  %v644_v32 = vld [vmem:[#allocation4 + $0x3c0] sm:$0xff] }
  0x3c   :  { %344 = vmatpush.msrb.mxu3 %v161_v38  ;;  %275 = vmatpush.msrb.mxu0 %v65_v39  ;;  %v542_v31 = vld [vmem:[#allocation4 + $0x90] sm:$0xff]  ;;  %v540_v34 = vld [vmem:[#allocation4 + $0x80] sm:$0xff] }
  0x3d   :  { %298 = vmatpush.msrb.mxu1 %v97_v40  ;;  %323 = vmatpush.msrb.mxu2 %v125_v41  ;;  %v606_v33 = vld [vmem:[#allocation4 + $0x290] sm:$0xff]  ;;  %v604_v35 = vld [vmem:[#allocation4 + $0x280] sm:$0xff] }
  0x3e   :  { %345 = vmatpush.msrb.mxu3 %v159_v42  ;;  %276 = vmatpush.msrb.mxu0 %v63_v43  ;;  %v574_v36 = vld [vmem:[#allocation4 + $0x190] sm:$0xff]  ;;  %v640_v37 = vld [vmem:[#allocation4 + $0x3a0] sm:$0xff] }
  0x3f   :  { %299 = vmatpush.msrb.mxu1 %v95_v44  ;;  %324 = vmatpush.msrb.mxu2 %v123_v45  ;;  %v602_v38 = vld [vmem:[#allocation4 + $0x270] sm:$0xff]  ;;  %v536_v39 = vld [vmem:[#allocation4 + $0x60] sm:$0xff] }
  0x40   :  { %346 = vmatpush.msrb.mxu3 %v157_v46  ;;  %277 = vmatpush.msrb.mxu0 %v61_v47  ;;  %v600_v40 = vld [vmem:[#allocation4 + $0x260] sm:$0xff]  ;;  %v534_v41 = vld [vmem:[#allocation4 + $0x50] sm:$0xff] }
  0x41   :  { %300 = vmatpush.msrb.mxu1 %v93_v48  ;;  %325 = vmatpush.msrb.mxu2 %v121_v49  ;;  %v598_v42 = vld [vmem:[#allocation4 + $0x250] sm:$0xff]  ;;  %v532_v43 = vld [vmem:[#allocation4 + $0x40] sm:$0xff] }
  0x42   :  { %347 = vmatpush.msrb.mxu3 %v155_v50  ;;  %278 = vmatpush.msrb.mxu0 %v59_v51  ;;  %v596_v44 = vld [vmem:[#allocation4 + $0x240] sm:$0xff]  ;;  %v530_v45 = vld [vmem:[#allocation4 + $0x30] sm:$0xff] }
  0x43   :  { %301 = vmatpush.msrb.mxu1 %v91_v52  ;;  %326 = vmatpush.msrb.mxu2 %v119_v53  ;;  %v594_v46 = vld [vmem:[#allocation4 + $0x230] sm:$0xff]  ;;  %v528_v47 = vld [vmem:[#allocation4 + $0x20] sm:$0xff] }
  0x44   :  { %348 = vmatpush.msrb.mxu3 %v153_v54  ;;  %279 = vmatpush.msrb.mxu0 %v57_v55  ;;  %v592_v48 = vld [vmem:[#allocation4 + $0x220] sm:$0xff]  ;;  %v526_v49 = vld [vmem:[#allocation4 + $0x10] sm:$0xff] }
  0x45   :  { %302 = vmatpush.msrb.mxu1 %v89_v56  ;;  %327 = vmatpush.msrb.mxu2 %v117_v57  ;;  %v590_v50 = vld [vmem:[#allocation4 + $0x210] sm:$0xff]  ;;  %v524_v51 = vld [vmem:[#allocation4] sm:$0xff] }
  0x46   :  { %349 = vmatpush.msrb.mxu3 %v151_v58  ;;  %280 = vmatpush.msrb.mxu0 %v55_v59  ;;  %v682_v52 = vld [vmem:[#allocation4 + $0x4f0] sm:$0xff]  ;;  %v588_v53 = vld [vmem:[#allocation4 + $0x200] sm:$0xff] }
  0x47   :  { %303 = vmatpush.msrb.mxu1 %v87_v60  ;;  %328 = vmatpush.msrb.mxu2 %v115_v61  ;;  %v746_v54 = vld [vmem:[#allocation4 + $0x6f0] sm:$0xff]  ;;  %v680_v55 = vld [vmem:[#allocation4 + $0x4e0] sm:$0xff] }
  0x48   :  { %350 = vmatpush.msrb.mxu3 %v149_v0  ;;  %281 = vmatpush.msrb.mxu0 %v53_v1  ;;  %v744_v56 = vld [vmem:[#allocation4 + $0x6e0] sm:$0xff]  ;;  %v678_v57 = vld [vmem:[#allocation4 + $0x4d0] sm:$0xff] }
  0x49   :  { %304 = vmatpush.msrb.mxu1 %v85_v2  ;;  %329 = vmatpush.msrb.mxu2 %v113_v3  ;;  %v742_v58 = vld [vmem:[#allocation4 + $0x6d0] sm:$0xff]  ;;  %v676_v59 = vld [vmem:[#allocation4 + $0x4c0] sm:$0xff] }
  0x4a   :  { %351 = vmatpush.msrb.mxu3 %v147_v4  ;;  %330 = vmatmul.f32.vlgmr.msrb.gmra.mxu2 %v2317_v62  ;;  %v552_v62 = vld [vmem:[#allocation4 + $0xe0] sm:$0xff]  ;;  %v674_v61 = vld [vmem:[#allocation4 + $0x4b0] sm:$0xff] }
  0x4b   :  { %282 = vmatpush.msrb.mxu0 %v51_v7  ;;  %305 = vmatpush.msrb.mxu1 %v83_v8  ;;  %v740_v60 = vld [vmem:[#allocation4 + $0x6c0] sm:$0xff]  ;;  %v738_v0 = vld [vmem:[#allocation4 + $0x6b0] sm:$0xff] }
  0x4c   :  { %352 = vmatpush.msrb.mxu3 %v145_v9  ;;  %890 = vmatpush.msra.mxu2 %v618_v10  ;;  %v672_v1 = vld [vmem:[#allocation4 + $0x4a0] sm:$0xff]  ;;  %v670_v3 = vld [vmem:[#allocation4 + $0x490] sm:$0xff] }
  0x4d   :  { %353 = vmatmul.f32.vlgmr.msrb.gmra.mxu3 %v2322_v63  ;;  %283 = vmatpush.msrb.mxu0 %v49_v11  ;;  %v548_v63 = vld [vmem:[#allocation4 + $0xc0] sm:$0xff]  ;;  %v638_v8 = vld [vmem:[#allocation4 + $0x390] sm:$0xff] }
  0x4e   :  { %306 = vmatpush.msrb.mxu1 %v81_v12  ;;  %284 = vmatmul.f32.vlgmr.msrb.gmra.mxu0 %v2344_v5  ;;  %v612_v5 = vld [vmem:[#allocation4 + $0x2c0] sm:$0xff]  ;;  %v734_v9 = vld [vmem:[#allocation4 + $0x690] sm:$0xff] }
  0x4f   :  { %307 = vmatmul.f32.vlgmr.msrb.gmra.mxu1 %v2349_v6  ;;  %844 = vmatpush.msra.mxu0 %v554_v13  ;;  %v610_v6 = vld [vmem:[#allocation4 + $0x2b0] sm:$0xff]  ;;  %v736_v2 = vld [vmem:[#allocation4 + $0x6a0] sm:$0xff] }
  0x50   :  { %891 = vmatpush.msra.mxu2 %v616_v14  ;;  %867 = vmatpush.msra.mxu1 %v586_v16  ;;  %v572_v4 = vld [vmem:[#allocation4 + $0x180] sm:$0xff]  ;;  %v570_v10 = vld [vmem:[#allocation4 + $0x170] sm:$0xff] }
  0x51   :  { %845 = vmatpush.msra.mxu0 %v552_v62  ;;  %913 = vmatpush.msra.mxu3 %v650_v21  ;;  %v668_v7 = vld [vmem:[#allocation4 + $0x480] sm:$0xff]  ;;  %v666_v11 = vld [vmem:[#allocation4 + $0x470] sm:$0xff] }
  0x52   :  { %333 = vmatmul.f32.gmra.mxu2 %v2380_v15  ;;  %868 = vmatpush.msra.mxu1 %v584_v17  ;;  %v608_v15 = vld [vmem:[#allocation4 + $0x2a0] sm:$0xff]  ;;  %v634_v62 = vld [vmem:[#allocation4 + $0x370] sm:$0xff] }
  0x53   :  { %846 = vmatpush.msra.mxu0 %v550_v18  ;;  %892 = vmatpush.msra.mxu2 %v614_v19  ;;  %v636_v12 = vld [vmem:[#allocation4 + $0x380] sm:$0xff]  ;;  %v730_v17 = vld [vmem:[#allocation4 + $0x670] sm:$0xff] }
  0x54   :  { %869 = vmatpush.msra.mxu1 %v582_v22  ;;  %914 = vmatpush.msra.mxu3 %v648_v23  ;;  %v732_v13 = vld [vmem:[#allocation4 + $0x680] sm:$0xff]  ;;  %v566_v18 = vld [vmem:[#allocation4 + $0x150] sm:$0xff] }
  0x55   :  { %356 = vmatmul.f32.gmra.mxu3 %v2398_v20  ;;  %847 = vmatpush.msra.mxu0 %v548_v63  ;;  %v576_v20 = vld [vmem:[#allocation4 + $0x1a0] sm:$0xff]  ;;  %v662_v19 = vld [vmem:[#allocation4 + $0x450] sm:$0xff] }
  0x56   :  { %287 = vmatmul.f32.gmra.mxu0 %v2415_v25  ;;  %893 = vmatpush.msra.mxu2 %v612_v5  ;;  %v642_v25 = vld [vmem:[#allocation4 + $0x3b0] sm:$0xff]  ;;  %v568_v14 = vld [vmem:[#allocation4 + $0x160] sm:$0xff] }
  0x57   :  { %310 = vmatmul.f32.gmra.mxu1 %v2421_v26  ;;  %848 = vmatpush.msra.mxu0 %v546_v24  ;;  %v538_v26 = vld [vmem:[#allocation4 + $0x70] sm:$0xff]  ;;  %v664_v16 = vld [vmem:[#allocation4 + $0x460] sm:$0xff] }
  0x58   :  { %894 = vmatpush.msra.mxu2 %v610_v6  ;;  %870 = vmatpush.msra.mxu1 %v580_v27  ;;  %v632_v21 = vld [vmem:[#allocation4 + $0x360] sm:$0xff]  ;;  %v630_v5 = vld [vmem:[#allocation4 + $0x350] sm:$0xff] }
  0x59   :  { %849 = vmatpush.msra.mxu0 %v544_v28  ;;  %915 = vmatpush.msra.mxu3 %v646_v29  ;;  %v728_v22 = vld [vmem:[#allocation4 + $0x660] sm:$0xff]  ;;  %v726_v24 = vld [vmem:[#allocation4 + $0x650] sm:$0xff]  ;;  %v2083_v29 = vmov 0.0  }
  0x5a   :  { %895 = vmatpush.msra.mxu2 %v608_v15  ;;  %871 = vmatpush.msra.mxu1 %v578_v30  ;;  %v564_v63 = vld [vmem:[#allocation4 + $0x140] sm:$0xff]  ;;  %v562_v6 = vld [vmem:[#allocation4 + $0x130] sm:$0xff]  ;;  %360 = vst [vmem:[#allocation2 + $0x30] sm:$0x3] %v2083_v29 }
  0x5b   :  { %850 = vmatpush.msra.mxu0 %v542_v31  ;;  %916 = vmatpush.msra.mxu3 %v644_v32  ;;  %v660_v23 = vld [vmem:[#allocation4 + $0x440] sm:$0xff]  ;;  %v658_v27 = vld [vmem:[#allocation4 + $0x430] sm:$0xff]  ;;  %361 = vst [vmem:[#allocation2] sm:$0x3] %v2083_v29 }
  0x5c   :  { %896 = vmatpush.msra.mxu2 %v606_v33  ;;  %872 = vmatpush.msra.mxu1 %v576_v20  ;;  %v628_v28 = vld [vmem:[#allocation4 + $0x340] sm:$0xff]  ;;  %362 = vst [vmem:[#allocation2 + $0x28] sm:$0x3] %v2083_v29  ;;  %v626_v32 = vld [vmem:[#allocation4 + $0x330] sm:$0xff] }
  0x5d   :  { %851 = vmatpush.msra.mxu0 %v540_v34  ;;  %917 = vmatpush.msra.mxu3 %v642_v25  ;;  %v724_v15 = vld [vmem:[#allocation4 + $0x640] sm:$0xff]  ;;  %v722_v33 = vld [vmem:[#allocation4 + $0x630] sm:$0xff]  ;;  %363 = vst [vmem:[#allocation2 + $0x20] sm:$0x3] %v2083_v29 }
  0x5e   :  { %897 = vmatpush.msra.mxu2 %v604_v35  ;;  %873 = vmatpush.msra.mxu1 %v574_v36  ;;  %v560_v30 = vld [vmem:[#allocation4 + $0x120] sm:$0xff]  ;;  %v558_v20 = vld [vmem:[#allocation4 + $0x110] sm:$0xff]  ;;  %364 = vst [vmem:[#allocation2 + $0x8] sm:$0xc] %v2083_v29 }
  0x5f   :  { %852 = vmatpush.msra.mxu0 %v538_v26  ;;  %918 = vmatpush.msra.mxu3 %v640_v37  ;;  %v656_v31 = vld [vmem:[#allocation4 + $0x420] sm:$0xff]  ;;  %v654_v34 = vld [vmem:[#allocation4 + $0x410] sm:$0xff]  ;;  %365 = vst [vmem:[#allocation2 + $0x10] sm:$0xc] %v2083_v29 }
  0x60   :  { %898 = vmatpush.msra.mxu2 %v602_v38  ;;  %874 = vmatpush.msra.mxu1 %v572_v4  ;;  %v624_v25 = vld [vmem:[#allocation4 + $0x320] sm:$0xff]  ;;  %366 = vst [vmem:[#allocation2 + $0x18] sm:$0xc] %v2083_v29  ;;  %v622_v37 = vld [vmem:[#allocation4 + $0x310] sm:$0xff] }
  0x61   :  { %853 = vmatpush.msra.mxu0 %v536_v39  ;;  %919 = vmatpush.msra.mxu3 %v638_v8  ;;  %v720_v35 = vld [vmem:[#allocation4 + $0x620] sm:$0xff]  ;;  %367 = vst [vmem:[#allocation2 + $0x38] sm:$0xc] %v2083_v29  ;;  %v714_v38 = vld [vmem:[#allocation4 + $0x5f0] sm:$0xff] }
  0x62   :  { %899 = vmatpush.msra.mxu2 %v600_v40  ;;  %875 = vmatpush.msra.mxu1 %v570_v10  ;;  %v556_v36 = vld [vmem:[#allocation4 + $0x100] sm:$0xff]  ;;  %v718_v39 = vld [vmem:[#allocation4 + $0x610] sm:$0xff]  ;;  %1307 = vst.msk [vmem:[#allocation3 + $0xa] sm:$0x3] %vm1304_vm4, %v2083_v29 }
  0x63   :  { %854 = vmatpush.msra.mxu0 %v534_v41  ;;  %920 = vmatpush.msra.mxu3 %v636_v12  ;;  %v652_v26 = vld [vmem:[#allocation4 + $0x400] sm:$0xff]  ;;  %1305 = vst.msk [vmem:[#allocation3] sm:$0x3] %vm1304_vm4, %v2083_v29 }
  0x64   :  { %900 = vmatpush.msra.mxu2 %v598_v42  ;;  %876 = vmatpush.msra.mxu1 %v568_v14  ;;  %v620_v40 = vld [vmem:[#allocation4 + $0x300] sm:$0xff]  ;;  %1306 = vst.msk [vmem:[#allocation3 + $0x10] sm:$0x3] %vm1304_vm4, %v2083_v29 }
  0x65   :  { %855 = vmatpush.msra.mxu0 %v532_v43  ;;  %921 = vmatpush.msra.mxu3 %v634_v62  ;;  %v712_v41 = vld [vmem:[#allocation4 + $0x5e0] sm:$0xff]  ;;  %v778_v43 = vld [vmem:[#allocation4 + $0x7f0] sm:$0xff]  ;;  %1308 = vst.msk [vmem:[#allocation3 + $0x1a] sm:$0x3] %vm1304_vm4, %v2083_v29 }
  0x66   :  { %901 = vmatpush.msra.mxu2 %v596_v44  ;;  %877 = vmatpush.msra.mxu1 %v566_v18  ;;  %v716_v42 = vld [vmem:[#allocation4 + $0x600] sm:$0xff]  ;;  %v710_v44 = vld [vmem:[#allocation4 + $0x5d0] sm:$0xff] }
  0x67   :  { %856 = vmatpush.msra.mxu0 %v530_v45  ;;  %922 = vmatpush.msra.mxu3 %v632_v21  ;;  %v776_v45 = vld [vmem:[#allocation4 + $0x7e0] sm:$0xff]  ;;  %v690_v18 = vld [vmem:[#allocation4 + $0x530] sm:$0xff] }
  0x68   :  { %902 = vmatpush.msra.mxu2 %v594_v46  ;;  %878 = vmatpush.msra.mxu1 %v564_v63  ;;  %v708_v46 = vld [vmem:[#allocation4 + $0x5c0] sm:$0xff] }
  0x69   :  { %857 = vmatpush.msra.mxu0 %v528_v47  ;;  %923 = vmatpush.msra.mxu3 %v630_v5  ;;  %v774_v47 = vld [vmem:[#allocation4 + $0x7d0] sm:$0xff]  ;;  %v696_v4 = vld [vmem:[#allocation4 + $0x560] sm:$0xff] }
  0x6a   :  { %903 = vmatpush.msra.mxu2 %v592_v48  ;;  %879 = vmatpush.msra.mxu1 %v562_v6  ;;  %v706_v48 = vld [vmem:[#allocation4 + $0x5b0] sm:$0xff]  ;;  %v760_v12 = vld [vmem:[#allocation4 + $0x760] sm:$0xff] }
  0x6b   :  { %858 = vmatpush.msra.mxu0 %v526_v49  ;;  %924 = vmatpush.msra.mxu3 %v628_v28  ;;  %v772_v49 = vld [vmem:[#allocation4 + $0x7c0] sm:$0xff] }
  0x6c   :  { %904 = vmatpush.msra.mxu2 %v590_v50  ;;  %880 = vmatpush.msra.mxu1 %v560_v30  ;;  %v704_v50 = vld [vmem:[#allocation4 + $0x5a0] sm:$0xff]  ;;  %v754_v30 = vld [vmem:[#allocation4 + $0x730] sm:$0xff] }
  0x6d   :  { %859 = vmatpush.msra.mxu0 %v524_v51  ;;  %925 = vmatpush.msra.mxu3 %v626_v32  ;;  %v692_v14 = vld [vmem:[#allocation4 + $0x540] sm:$0xff]  ;;  %v806_v32 = vld [vmem:[#allocation4 + $0x8d0] sm:$0xff] }
  0x6e   :  { %905 = vmatpush.msra.mxu2 %v588_v53  ;;  %881 = vmatpush.msra.mxu1 %v558_v20  ;;  %v702_v53 = vld [vmem:[#allocation4 + $0x590] sm:$0xff]  ;;  %v688_v63 = vld [vmem:[#allocation4 + $0x520] sm:$0xff] }
  0x6f   :  { %936 = vmatpush.msrb.mxu0 %v682_v52  ;;  %926 = vmatpush.msra.mxu3 %v624_v25  ;;  %v770_v52 = vld [vmem:[#allocation4 + $0x7b0] sm:$0xff]  ;;  %v808_v6 = vld [vmem:[#allocation4 + $0x8e0] sm:$0xff]  ;;  %v553_v25 = vld [vmem:[#allocation4 + $0xe8] sm:$0xff] }
  0x70   :  { %982 = vmatpush.msrb.mxu2 %v746_v54  ;;  %882 = vmatpush.msra.mxu1 %v556_v36  ;;  %v686_v20 = vld [vmem:[#allocation4 + $0x510] sm:$0xff]  ;;  %v684_v36 = vld [vmem:[#allocation4 + $0x500] sm:$0xff] }
  0x71   :  { %937 = vmatpush.msrb.mxu0 %v680_v55  ;;  %927 = vmatpush.msra.mxu3 %v622_v37  ;;  %v768_v55 = vld [vmem:[#allocation4 + $0x7a0] sm:$0xff]  ;;  %v551_v37 = vld [vmem:[#allocation4 + $0xd8] sm:$0xff] }
  0x72   :  { %983 = vmatpush.msrb.mxu2 %v744_v56  ;;  %959 = vmatpush.msrb.mxu1 %v714_v38  ;;  %v802_v38 = vld [vmem:[#allocation4 + $0x8b0] sm:$0xff] }
  0x73   :  { %938 = vmatpush.msrb.mxu0 %v678_v57  ;;  %928 = vmatpush.msra.mxu3 %v620_v40  ;;  %v748_v40 = vld [vmem:[#allocation4 + $0x700] sm:$0xff] }
  0x74   :  { %984 = vmatpush.msrb.mxu2 %v742_v58  ;;  %960 = vmatpush.msrb.mxu1 %v712_v41  ;;  %v800_v41 = vld [vmem:[#allocation4 + $0x8a0] sm:$0xff] }
  0x75   :  { %939 = vmatpush.msrb.mxu0 %v676_v59  ;;  %1005 = vmatpush.msrb.mxu3 %v778_v43  ;;  %v700_v59 = vld [vmem:[#allocation4 + $0x580] sm:$0xff] }
  0x76   :  { %985 = vmatpush.msrb.mxu2 %v740_v60  ;;  %961 = vmatpush.msrb.mxu1 %v710_v44 }
  0x77   :  { %940 = vmatpush.msrb.mxu0 %v674_v61  ;;  %1006 = vmatpush.msrb.mxu3 %v776_v45  ;;  %v766_v61 = vld [vmem:[#allocation4 + $0x790] sm:$0xff] }
  0x78   :  { %986 = vmatpush.msrb.mxu2 %v738_v0  ;;  %962 = vmatpush.msrb.mxu1 %v708_v46  ;;  %v698_v0 = vld [vmem:[#allocation4 + $0x570] sm:$0xff] }
  0x79   :  { %941 = vmatpush.msrb.mxu0 %v672_v1  ;;  %1007 = vmatpush.msrb.mxu3 %v774_v47 }
  0x7a   :  { %987 = vmatpush.msrb.mxu2 %v736_v2  ;;  %963 = vmatpush.msrb.mxu1 %v706_v48  ;;  %v764_v2 = vld [vmem:[#allocation4 + $0x780] sm:$0xff]  ;;  %v547_v48 = vld [vmem:[#allocation4 + $0xb8] sm:$0xff] }
  0x7b   :  { %942 = vmatpush.msrb.mxu0 %v670_v3  ;;  %1008 = vmatpush.msrb.mxu3 %v772_v49  ;;  %v798_v49 = vld [vmem:[#allocation4 + $0x890] sm:$0xff] }
  0x7c   :  { %988 = vmatpush.msrb.mxu2 %v734_v9  ;;  %964 = vmatpush.msrb.mxu1 %v704_v50  ;;  %v694_v9 = vld [vmem:[#allocation4 + $0x550] sm:$0xff] }
  0x7d   :  { %943 = vmatpush.msrb.mxu0 %v668_v7  ;;  %1009 = vmatpush.msrb.mxu3 %v770_v52  ;;  %v762_v7 = vld [vmem:[#allocation4 + $0x770] sm:$0xff] }
  0x7e   :  { %989 = vmatpush.msrb.mxu2 %v732_v13  ;;  %965 = vmatpush.msrb.mxu1 %v702_v53 }
  0x7f   :  { %944 = vmatpush.msrb.mxu0 %v666_v11  ;;  %1010 = vmatpush.msrb.mxu3 %v768_v55 }
  0x80   :  { %990 = vmatpush.msrb.mxu2 %v730_v17  ;;  %966 = vmatpush.msrb.mxu1 %v700_v59  ;;  %v794_v59 = vld [vmem:[#allocation4 + $0x870] sm:$0xff] }
  0x81   :  { %945 = vmatpush.msrb.mxu0 %v664_v16  ;;  %1011 = vmatpush.msrb.mxu3 %v766_v61  ;;  %v758_v16 = vld [vmem:[#allocation4 + $0x750] sm:$0xff]  ;;  %v541_v61 = vld [vmem:[#allocation4 + $0x88] sm:$0xff] }
  0x82   :  { %991 = vmatpush.msrb.mxu2 %v728_v22  ;;  %967 = vmatpush.msrb.mxu1 %v698_v0  ;;  %v810_v22 = vld [vmem:[#allocation4 + $0x8f0] sm:$0xff] }
  0x83   :  { %946 = vmatpush.msrb.mxu0 %v662_v19  ;;  %1012 = vmatpush.msrb.mxu3 %v764_v2  ;;  %v756_v19 = vld [vmem:[#allocation4 + $0x740] sm:$0xff] }
  0x84   :  { %992 = vmatpush.msrb.mxu2 %v726_v24  ;;  %968 = vmatpush.msrb.mxu1 %v696_v4  ;;  %v792_v2 = vld [vmem:[#allocation4 + $0x860] sm:$0xff] }
  0x85   :  { %947 = vmatpush.msrb.mxu0 %v660_v23  ;;  %1013 = vmatpush.msrb.mxu3 %v762_v7 }
  0x86   :  { %993 = vmatpush.msrb.mxu2 %v724_v15  ;;  %969 = vmatpush.msrb.mxu1 %v694_v9  ;;  %v539_v9 = vld [vmem:[#allocation4 + $0x78] sm:$0xff] }
  0x87   :  { %948 = vmatpush.msrb.mxu0 %v658_v27  ;;  %1014 = vmatpush.msrb.mxu3 %v760_v12 }
  0x88   :  { %994 = vmatpush.msrb.mxu2 %v722_v33  ;;  %970 = vmatpush.msrb.mxu1 %v692_v14  ;;  %v537_v14 = vld [vmem:[#allocation4 + $0x68] sm:$0xff] }
  0x89   :  { %949 = vmatpush.msrb.mxu0 %v656_v31  ;;  %1015 = vmatpush.msrb.mxu3 %v758_v16  ;;  %v555_v31 = vld [vmem:[#allocation4 + $0xf8] sm:$0xff] }
  0x8a   :  { %995 = vmatpush.msrb.mxu2 %v720_v35  ;;  %971 = vmatpush.msrb.mxu1 %v690_v18  ;;  %v804_v35 = vld [vmem:[#allocation4 + $0x8c0] sm:$0xff] }
  0x8b   :  { %950 = vmatpush.msrb.mxu0 %v654_v34  ;;  %1016 = vmatpush.msrb.mxu3 %v756_v19  ;;  %v752_v34 = vld [vmem:[#allocation4 + $0x720] sm:$0xff] }
  0x8c   :  { %996 = vmatpush.msrb.mxu2 %v718_v39  ;;  %972 = vmatpush.msrb.mxu1 %v688_v63  ;;  %v549_v39 = vld [vmem:[#allocation4 + $0xc8] sm:$0xff]  ;;  %v535_v63 = vld [vmem:[#allocation4 + $0x58] sm:$0xff] }
  0x8d   :  { %951 = vmatpush.msrb.mxu0 %v652_v26  ;;  %1017 = vmatpush.msrb.mxu3 %v754_v30  ;;  %v750_v26 = vld [vmem:[#allocation4 + $0x710] sm:$0xff]  ;;  %v784_v30 = vld [vmem:[#allocation4 + $0x820] sm:$0xff] }
  0x8e   :  { %997 = vmatpush.msrb.mxu2 %v716_v42  ;;  %973 = vmatpush.msrb.mxu1 %v686_v20  ;;  %v531_v20 = vld [vmem:[#allocation4 + $0x38] sm:$0xff] }
  0x8f   :  { %1018 = vmatpush.msrb.mxu3 %v752_v34 }
  0x90   :  { %974 = vmatpush.msrb.mxu1 %v684_v36 }
  0x91   :  { %1019 = vmatpush.msrb.mxu3 %v750_v26 }
  0x93   :  { %1020 = vmatpush.msrb.mxu3 %v748_v40  ;;  %v780_v40 = vld [vmem:[#allocation4 + $0x800] sm:$0xff] }
  0xa8   :  { %v193_v51 = vpop.f32.mrf.mxu0 }
  0xa9   :  { %v216_v54 = vpop.f32.mrf.mxu1 }
  0xaa   :  { %v217_v56 = vadd.f32 %v216_v54, %v193_v51  ;;  %v545_v51 = vld [vmem:[#allocation4 + $0xa8] sm:$0xff]  ;;  %v796_v54 = vld [vmem:[#allocation4 + $0x880] sm:$0xff] }
  0xab   :  { %v239_v57 = vpop.f32.mrf.mxu2  ;;  %v262_v58 = vpop.f32.mrf.mxu3 }
  0xac   :  { %v240_v60 = vadd.f32 %v239_v57, %v217_v56 }
  0xae   :  { %v263_v1 = vadd.f32 %v262_v58, %v240_v60  ;;  %v543_v58 = vld [vmem:[#allocation4 + $0x98] sm:$0xff] }
  0xb0   :  { %v372_v3 = vrot.slane %v263_v1, 6 }
  0xb2   :  { %380 = vst [vmem:[#allocation2 + $0x30] sm:$0xfc] %v372_v3  ;;  %v196_v8 = vpop.f32.mrf.mxu0 }
  0xb3   :  { %382 = vst [vmem:[#allocation2 + $0x8] sm:$0x3] %v372_v3  ;;  %v219_v10 = vpop.f32.mrf.mxu1  ;;  %v242_v11 = vpop.f32.mrf.mxu2 }
  0xb4   :  { %v220_v13 = vadd.f32 %v219_v10, %v196_v8  ;;  %v790_v10 = vld [vmem:[#allocation4 + $0x850] sm:$0xff] }
  0xb6   :  { %v243_v62 = vadd.f32 %v242_v11, %v220_v13  ;;  %v265_v17 = vpop.f32.mrf.mxu3 }
  0xb8   :  { %v266_v21 = vadd.f32 %v265_v17, %v243_v62  ;;  %v788_v17 = vld [vmem:[#allocation4 + $0x840] sm:$0xff] }
  0xb9   :  { %v2576_v23 = vld [vmem:[#allocation2 + $0x30] sm:$0xff] }
  0xba   :  { %v392_v5 = vld [vmem:[#allocation2 + $0x30] sm:$0xfe]  ;;  %v374_v24 = vrot.slane %v266_v21, 6  ;;  %860 = vmatmul.f32.vlgmr.msra.gmra.mxu0 %v2576_v23  ;;  %v394_v27 = vld [vmem:[#allocation2 + $0x8] sm:$0x1] }
  0xbb   :  { %v433_v28 = vrot.slane %v392_v5, 1  ;;  %1028 = vmatpush.msra.mxu0 %v810_v22  ;;  %v434_v15 = vrot.slane %v394_v27, 1  ;;  %v400_v42 = vld [vmem:[#allocation2 + $0x30] sm:$0xfc]  ;;  %v402_v43 = vld [vmem:[#allocation2 + $0x8] sm:$0x3] }
  0xbc   :  { %384 = vst [vmem:[#allocation2 + $0x28] sm:$0xfc] %v374_v24  ;;  %v458_v52 = vrot.slane %v400_v42, 2  ;;  %v459_v53 = vrot.slane %v402_v43, 2  ;;  %v408_v55 = vld [vmem:[#allocation2 + $0x30] sm:$0xf8] }
  0xbd   :  { %386 = vst [vmem:[#allocation2 + $0x18] sm:$0x3] %v374_v24  ;;  %1029 = vmatpush.msra.mxu0 %v808_v6  ;;  %v2580_v33 = vsel %vm432_vm0, %v433_v28, %v434_v15  ;;  %v410_v56 = vld [vmem:[#allocation2 + $0x8] sm:$0x7]  ;;  %v483_v0 = vrot.slane %v408_v55, 3  ;;  %v786_v5 = vld [vmem:[#allocation4 + $0x830] sm:$0xff] }
  0xbe   :  { %906 = vmatmul.f32.vlgmr.msra.gmra.mxu2 %v2580_v33  ;;  %v2591_v60 = vsel %vm457_vm1, %v458_v52, %v459_v53  ;;  %v484_v1 = vrot.slane %v410_v56, 3  ;;  %v533_v15 = vld [vmem:[#allocation4 + $0x48] sm:$0xff]  ;;  %v619_v42 = vld [vmem:[#allocation4 + $0x2f8] sm:$0xff] }
  0xbf   :  { %1074 = vmatpush.msra.mxu2 %v555_v31  ;;  %1030 = vmatpush.msra.mxu0 %v806_v32  ;;  %v418_v36 = vld [vmem:[#allocation2 + $0x8] sm:$0xf]  ;;  %v683_v56 = vld [vmem:[#allocation4 + $0x4f8] sm:$0xff] }
  0xc0   :  { %v2595_v13 = vsel %vm482_vm2, %v483_v0, %v484_v1  ;;  %v617_v53 = vld [vmem:[#allocation4 + $0x2e8] sm:$0xff]  ;;  %v615_v1 = vld [vmem:[#allocation4 + $0x2d8] sm:$0xff] }
  0xc1   :  { %1075 = vmatpush.msra.mxu2 %v553_v25  ;;  %1031 = vmatpush.msra.mxu0 %v804_v35  ;;  %v782_v25 = vld [vmem:[#allocation4 + $0x810] sm:$0xff] }
  0xc2   :  { %v416_v35 = vld [vmem:[#allocation2 + $0x30] sm:$0xf0] }
  0xc3   :  { %1076 = vmatpush.msra.mxu2 %v551_v37  ;;  %v2583_v44 = vld [vmem:[#allocation2 + $0x28] sm:$0xff]  ;;  %1032 = vmatpush.msra.mxu0 %v802_v38  ;;  %v508_v43 = vrot.slane %v416_v35, 4 }
  0xc4   :  { %v396_v45 = vld [vmem:[#allocation2 + $0x28] sm:$0xfe]  ;;  %863 = vmatmul.f32.gmra.mxu0 %v2583_v44  ;;  %v398_v46 = vld [vmem:[#allocation2 + $0x18] sm:$0x1] }
  0xc5   :  { %v439_v47 = vrot.slane %v396_v45, 1  ;;  %1077 = vmatpush.msra.mxu2 %v549_v39  ;;  %1033 = vmatpush.msra.mxu0 %v800_v41  ;;  %v440_v50 = vrot.slane %v398_v46, 1  ;;  %v404_v3 = vld [vmem:[#allocation2 + $0x28] sm:$0xfc]  ;;  %v406_v4 = vld [vmem:[#allocation2 + $0x18] sm:$0x3] }
  0xc6   :  { %v464_v16 = vrot.slane %v404_v3, 2  ;;  %v465_v62 = vrot.slane %v406_v4, 2  ;;  %v412_v18 = vld [vmem:[#allocation2 + $0x28] sm:$0xf8]  ;;  %v414_v19 = vld [vmem:[#allocation2 + $0x18] sm:$0x7] }
  0xc7   :  { %v2587_v57 = vsel %vm432_vm0, %v439_v47, %v440_v50  ;;  %1078 = vmatpush.msra.mxu2 %v547_v48  ;;  %1034 = vmatpush.msra.mxu0 %v798_v49  ;;  %v489_v27 = vrot.slane %v412_v18, 3  ;;  %v490_v28 = vrot.slane %v414_v19, 3  ;;  %v529_v39 = vld [vmem:[#allocation4 + $0x28] sm:$0xff]  ;;  %v509_v45 = vrot.slane %v418_v36, 4  ;;  %v527_v47 = vld [vmem:[#allocation4 + $0x18] sm:$0xff]  ;;  %v838_v3 = vld [vmem:[#allocation4 + $0x9d0] sm:$0xff] }
  0xc8   :  { %909 = vmatmul.f32.gmra.mxu2 %v2587_v57  ;;  %v2599_v6 = vsel %vm457_vm1, %v464_v16, %v465_v62  ;;  %v525_v49 = vld [vmem:[#allocation4 + $0x8] sm:$0xff]  ;;  %v583_v16 = vld [vmem:[#allocation4 + $0x1d8] sm:$0xff]  ;;  %v834_v62 = vld [vmem:[#allocation4 + $0x9b0] sm:$0xff] }
  0xc9   :  { %1079 = vmatpush.msra.mxu2 %v545_v51  ;;  %1035 = vmatpush.msra.mxu0 %v796_v54  ;;  %v2603_v38 = vsel %vm482_vm2, %v489_v27, %v490_v28  ;;  %v842_v51 = vld [vmem:[#allocation4 + $0x9f0] sm:$0xff]  ;;  %v2607_v52 = vsel %vm507_vm3, %v508_v43, %v509_v45  ;;  %v681_v4 = vld [vmem:[#allocation4 + $0x4e8] sm:$0xff]  ;;  %v832_v27 = vld [vmem:[#allocation4 + $0x9a0] sm:$0xff] }
  0xca   :  { %v609_v28 = vld [vmem:[#allocation4 + $0x2a8] sm:$0xff]  ;;  %v607_v36 = vld [vmem:[#allocation4 + $0x298] sm:$0xff] }
  0xcb   :  { %v285_v7 = vpop.f32.mrf.mxu0  ;;  %1080 = vmatpush.msra.mxu2 %v543_v58  ;;  %1036 = vmatpush.msra.mxu0 %v794_v59  ;;  %v840_v58 = vld [vmem:[#allocation4 + $0x9e0] sm:$0xff] }
  0xcc   :  { %v308_v8 = vpop.f32.mrf.mxu1  ;;  %952 = vmatmul.f32.vlgmr.msrb.gmra.mxu0 %v2591_v60 }
  0xcd   :  { %v309_v11 = vadd.f32 %v308_v8, %v285_v7  ;;  %v331_v12 = vpop.f32.mrf.mxu2  ;;  %1081 = vmatpush.msra.mxu2 %v541_v61  ;;  %1037 = vmatpush.msra.mxu0 %v792_v2  ;;  %v587_v2 = vld [vmem:[#allocation4 + $0x1f8] sm:$0xff]  ;;  %v613_v8 = vld [vmem:[#allocation4 + $0x2c8] sm:$0xff] }
  0xcf   :  { %v332_v21 = vadd.f32 %v331_v12, %v309_v11  ;;  %1082 = vmatpush.msra.mxu2 %v539_v9  ;;  %1038 = vmatpush.msra.mxu0 %v790_v10  ;;  %v420_v9 = vld [vmem:[#allocation2 + $0x28] sm:$0xf0]  ;;  %v422_v10 = vld [vmem:[#allocation2 + $0x18] sm:$0xf]  ;;  %v836_v12 = vld [vmem:[#allocation4 + $0x9c0] sm:$0xff] }
  0xd0   :  { %v354_v22 = vpop.f32.mrf.mxu3  ;;  %998 = vmatmul.f32.vlgmr.msrb.gmra.mxu2 %v2595_v13  ;;  %v585_v11 = vld [vmem:[#allocation4 + $0x1e8] sm:$0xff]  ;;  %v514_v18 = vrot.slane %v420_v9, 4  ;;  %v515_v19 = vrot.slane %v422_v10, 4  ;;  %v820_v10 = vld [vmem:[#allocation4 + $0x940] sm:$0xff] }
  0xd1   :  { %v355_v24 = vadd.f32 %v354_v22, %v332_v21  ;;  %1083 = vmatpush.msra.mxu2 %v537_v14  ;;  %1039 = vmatpush.msra.mxu0 %v788_v17  ;;  %v679_v14 = vld [vmem:[#allocation4 + $0x4d8] sm:$0xff]  ;;  %v677_v21 = vld [vmem:[#allocation4 + $0x4c8] sm:$0xff] }
  0xd2   :  { %v611_v17 = vld [vmem:[#allocation4 + $0x2b8] sm:$0xff]  ;;  %v665_v9 = vld [vmem:[#allocation4 + $0x468] sm:$0xff] }
  0xd3   :  { %v373_v31 = vrot.slane %v355_v24, 6  ;;  %v288_v32 = vpop.f32.mrf.mxu0  ;;  %1084 = vmatpush.msra.mxu2 %v535_v63  ;;  %1040 = vmatpush.msra.mxu0 %v786_v5  ;;  %v581_v63 = vld [vmem:[#allocation4 + $0x1c8] sm:$0xff] }
  0xd4   :  { %v311_v34 = vpop.f32.mrf.mxu1  ;;  %955 = vmatmul.f32.gmra.mxu0 %v2599_v6 }
  0xd5   :  { %381 = vst [vmem:[#allocation2] sm:$0xfc] %v373_v31  ;;  %v312_v26 = vadd.f32 %v311_v34, %v288_v32  ;;  %v334_v37 = vpop.f32.mrf.mxu2  ;;  %1085 = vmatpush.msra.mxu2 %v533_v15  ;;  %1041 = vmatpush.msra.mxu0 %v784_v30  ;;  %v2622_v30 = vsel %vm507_vm3, %v514_v18, %v515_v19  ;;  %v675_v32 = vld [vmem:[#allocation4 + $0x4b8] sm:$0xff]  ;;  %v830_v34 = vld [vmem:[#allocation4 + $0x990] sm:$0xff] }
  0xd6   :  { %383 = vst [vmem:[#allocation2 + $0x10] sm:$0x3] %v373_v31  ;;  %v579_v31 = vld [vmem:[#allocation4 + $0x1b8] sm:$0xff] }
  0xd7   :  { %v335_v41 = vadd.f32 %v334_v37, %v312_v26  ;;  %1086 = vmatpush.msra.mxu2 %v531_v20  ;;  %1042 = vmatpush.msra.mxu0 %v782_v25  ;;  %v577_v26 = vld [vmem:[#allocation4 + $0x1a8] sm:$0xff]  ;;  %v663_v18 = vld [vmem:[#allocation4 + $0x458] sm:$0xff] }
  0xd8   :  { %v357_v46 = vpop.f32.mrf.mxu3  ;;  %1001 = vmatmul.f32.gmra.mxu2 %v2603_v38  ;;  %v673_v37 = vld [vmem:[#allocation4 + $0x4a8] sm:$0xff]  ;;  %v595_v19 = vld [vmem:[#allocation4 + $0x238] sm:$0xff] }
  0xd9   :  { %v358_v48 = vadd.f32 %v357_v46, %v335_v41  ;;  %1087 = vmatpush.msra.mxu2 %v529_v39  ;;  %1043 = vmatpush.msra.mxu0 %v780_v40  ;;  %v828_v39 = vld [vmem:[#allocation4 + $0x980] sm:$0xff]  ;;  %v605_v40 = vld [vmem:[#allocation4 + $0x288] sm:$0xff]  ;;  %v575_v46 = vld [vmem:[#allocation4 + $0x198] sm:$0xff] }
  0xdb   :  { %1120 = vmatpush.msrb.mxu0 %v619_v42  ;;  %v375_v50 = vrot.slane %v358_v48, 6  ;;  %1088 = vmatpush.msra.mxu2 %v527_v47  ;;  %v671_v47 = vld [vmem:[#allocation4 + $0x498] sm:$0xff] }
  0xdc   :  { %v2609_v54 = vld [vmem:[#allocation2] sm:$0xff]  ;;  %1044 = vmatmul.f32.vlgmr.msra.gmra.mxu0 %v2607_v52  ;;  %v603_v48 = vld [vmem:[#allocation4 + $0x278] sm:$0xff] }
  0xdd   :  { %v393_v55 = vld [vmem:[#allocation2] sm:$0xfe]  ;;  %385 = vst [vmem:[#allocation2 + $0x20] sm:$0xfc] %v375_v50  ;;  %883 = vmatmul.f32.vlgmr.msra.gmra.mxu1 %v2609_v54  ;;  %1089 = vmatpush.msra.mxu2 %v525_v49  ;;  %v395_v59 = vld [vmem:[#allocation2 + $0x10] sm:$0x1] }
  0xde   :  { %v436_v61 = vrot.slane %v393_v55, 1  ;;  %387 = vst [vmem:[#allocation2 + $0x38] sm:$0x3] %v375_v50  ;;  %1051 = vmatpush.msra.mxu1 %v842_v51  ;;  %1121 = vmatpush.msrb.mxu0 %v617_v53  ;;  %v437_v0 = vrot.slane %v395_v59, 1  ;;  %v401_v25 = vld [vmem:[#allocation2] sm:$0xfc] }
  0xdf   :  { %1166 = vmatpush.msrb.mxu2 %v683_v56  ;;  %v403_v35 = vld [vmem:[#allocation2 + $0x10] sm:$0x3]  ;;  %v461_v41 = vrot.slane %v401_v25, 2  ;;  %v409_v43 = vld [vmem:[#allocation2] sm:$0xf8]  ;;  %v573_v50 = vld [vmem:[#allocation4 + $0x188] sm:$0xff] }
  0xe0   :  { %1052 = vmatpush.msra.mxu1 %v840_v58  ;;  %v2614_v7 = vsel %vm432_vm0, %v436_v61, %v437_v0  ;;  %1090 = vmatmul.f32.vlgmr.msra.gmra.mxu2 %v2576_v23  ;;  %v462_v42 = vrot.slane %v403_v35, 2  ;;  %v411_v45 = vld [vmem:[#allocation2 + $0x10] sm:$0x7]  ;;  %v486_v51 = vrot.slane %v409_v43, 3  ;;  %v669_v56 = vld [vmem:[#allocation4 + $0x488] sm:$0xff]  ;;  %v571_v59 = vld [vmem:[#allocation4 + $0x178] sm:$0xff] }
  0xe1   :  { %929 = vmatmul.f32.vlgmr.msra.gmra.mxu3 %v2614_v7  ;;  %1122 = vmatpush.msrb.mxu0 %v615_v1  ;;  %v826_v49 = vld [vmem:[#allocation4 + $0x970] sm:$0xff]  ;;  %v487_v53 = vrot.slane %v411_v45, 3  ;;  %v601_v58 = vld [vmem:[#allocation4 + $0x268] sm:$0xff]  ;;  %v667_v61 = vld [vmem:[#allocation4 + $0x478] sm:$0xff] }
  0xe2   :  { %1097 = vmatpush.msra.mxu3 %v587_v2  ;;  %1053 = vmatpush.msra.mxu1 %v838_v3  ;;  %v2631_v55 = vsel %vm457_vm1, %v461_v41, %v462_v42  ;;  %v822_v3 = vld [vmem:[#allocation4 + $0x950] sm:$0xff]  ;;  %v591_v35 = vld [vmem:[#allocation4 + $0x218] sm:$0xff]  ;;  %v589_v41 = vld [vmem:[#allocation4 + $0x208] sm:$0xff] }
  0xe3   :  { %1167 = vmatpush.msrb.mxu2 %v681_v4  ;;  %1123 = vmatpush.msrb.mxu0 %v613_v8  ;;  %v2635_v2 = vsel %vm482_vm2, %v486_v51, %v487_v53  ;;  %v599_v4 = vld [vmem:[#allocation4 + $0x258] sm:$0xff]  ;;  %v569_v8 = vld [vmem:[#allocation4 + $0x168] sm:$0xff] }
  0xe4   :  { %1098 = vmatpush.msra.mxu3 %v585_v11  ;;  %1054 = vmatpush.msra.mxu1 %v836_v12  ;;  %v2618_v23 = vld [vmem:[#allocation2 + $0x20] sm:$0xff]  ;;  %v597_v11 = vld [vmem:[#allocation4 + $0x248] sm:$0xff]  ;;  %v559_v42 = vld [vmem:[#allocation4 + $0x118] sm:$0xff] }
  0xe5   :  { %v397_v22 = vld [vmem:[#allocation2 + $0x20] sm:$0xfe]  ;;  %1168 = vmatpush.msrb.mxu2 %v679_v14  ;;  %886 = vmatmul.f32.gmra.mxu1 %v2618_v23  ;;  %v399_v5 = vld [vmem:[#allocation2 + $0x38] sm:$0x1]  ;;  %v653_v53 = vld [vmem:[#allocation4 + $0x408] sm:$0xff] }
  0xe6   :  { %v442_v24 = vrot.slane %v397_v22, 1  ;;  %1099 = vmatpush.msra.mxu3 %v583_v16  ;;  %1055 = vmatpush.msra.mxu1 %v834_v62  ;;  %v443_v15 = vrot.slane %v399_v5, 1  ;;  %v405_v0 = vld [vmem:[#allocation2 + $0x20] sm:$0xfc]  ;;  %v407_v1 = vld [vmem:[#allocation2 + $0x38] sm:$0x3] }
  0xe7   :  { %1124 = vmatpush.msrb.mxu0 %v611_v17  ;;  %1169 = vmatpush.msrb.mxu2 %v677_v21  ;;  %v467_v12 = vrot.slane %v405_v0, 2  ;;  %v468_v14 = vrot.slane %v407_v1, 2  ;;  %v413_v16 = vld [vmem:[#allocation2 + $0x20] sm:$0xf8]  ;;  %v415_v62 = vld [vmem:[#allocation2 + $0x38] sm:$0x7] }
  0xe8   :  { %1047 = vmatmul.f32.gmra.mxu0 %v2622_v30  ;;  %1100 = vmatpush.msra.mxu3 %v581_v63  ;;  %v2626_v20 = vsel %vm432_vm0, %v442_v24, %v443_v15  ;;  %v567_v17 = vld [vmem:[#allocation4 + $0x158] sm:$0xff]  ;;  %v818_v21 = vld [vmem:[#allocation4 + $0x930] sm:$0xff]  ;;  %v565_v22 = vld [vmem:[#allocation4 + $0x148] sm:$0xff]  ;;  %v492_v63 = vrot.slane %v413_v16, 3  ;;  %v493_v5 = vrot.slane %v415_v62, 3 }
  0xe9   :  { %1056 = vmatpush.msra.mxu1 %v832_v27  ;;  %1125 = vmatpush.msrb.mxu0 %v609_v28  ;;  %v2639_v24 = vsel %vm457_vm1, %v467_v12, %v468_v14  ;;  %v661_v27 = vld [vmem:[#allocation4 + $0x448] sm:$0xff]  ;;  %v816_v15 = vld [vmem:[#allocation4 + $0x920] sm:$0xff]  ;;  %v423_v0 = vld [vmem:[#allocation2 + $0x38] sm:$0xf] }
  0xea   :  { %932 = vmatmul.f32.gmra.mxu3 %v2626_v20  ;;  %1170 = vmatpush.msrb.mxu2 %v675_v32  ;;  %v593_v28 = vld [vmem:[#allocation4 + $0x228] sm:$0xff]  ;;  %v659_v32 = vld [vmem:[#allocation4 + $0x438] sm:$0xff]  ;;  %v2643_v25 = vsel %vm482_vm2, %v492_v63, %v493_v5  ;;  %v518_v12 = vrot.slane %v423_v0, 4 }
  0xeb   :  { %1101 = vmatpush.msra.mxu3 %v579_v31  ;;  %1057 = vmatpush.msra.mxu1 %v830_v34  ;;  %v563_v31 = vld [vmem:[#allocation4 + $0x138] sm:$0xff]  ;;  %v814_v34 = vld [vmem:[#allocation4 + $0x910] sm:$0xff]  ;;  %v713_v1 = vld [vmem:[#allocation4 + $0x5e8] sm:$0xff] }
  0xec   :  { %1093 = vmatmul.f32.gmra.mxu2 %v2583_v44  ;;  %1126 = vmatpush.msrb.mxu0 %v607_v36  ;;  %v824_v44 = vld [vmem:[#allocation4 + $0x960] sm:$0xff]  ;;  %v643_v14 = vld [vmem:[#allocation4 + $0x3b8] sm:$0xff]  ;;  %v709_v16 = vld [vmem:[#allocation4 + $0x5c8] sm:$0xff] }
  0xed   :  { %1102 = vmatpush.msra.mxu3 %v577_v26  ;;  %1171 = vmatpush.msrb.mxu2 %v673_v37  ;;  %v417_v36 = vld [vmem:[#allocation2] sm:$0xf0]  ;;  %v419_v26 = vld [vmem:[#allocation2 + $0x10] sm:$0xf]  ;;  %v561_v37 = vld [vmem:[#allocation4 + $0x128] sm:$0xff] }
  0xee   :  { %1058 = vmatpush.msra.mxu1 %v828_v39  ;;  %1127 = vmatpush.msrb.mxu0 %v605_v40  ;;  %v657_v39 = vld [vmem:[#allocation4 + $0x428] sm:$0xff]  ;;  %v812_v40 = vld [vmem:[#allocation4 + $0x900] sm:$0xff]  ;;  %v511_v43 = vrot.slane %v417_v36, 4  ;;  %v512_v45 = vrot.slane %v419_v26, 4  ;;  %v735_v63 = vld [vmem:[#allocation4 + $0x698] sm:$0xff] }
  0xef   :  { %1103 = vmatpush.msra.mxu3 %v575_v46  ;;  %1172 = vmatpush.msrb.mxu2 %v671_v47  ;;  %v651_v46 = vld [vmem:[#allocation4 + $0x3f8] sm:$0xff]  ;;  %v805_v62 = vld [vmem:[#allocation4 + $0x8c8] sm:$0xff] }
  0xf0   :  { %975 = vmatmul.f32.vlgmr.msrb.gmra.mxu1 %v2631_v55  ;;  %1128 = vmatpush.msrb.mxu0 %v603_v48  ;;  %v655_v47 = vld [vmem:[#allocation4 + $0x418] sm:$0xff]  ;;  %v2648_v51 = vsel %vm507_vm3, %v511_v43, %v512_v45  ;;  %v801_v5 = vld [vmem:[#allocation4 + $0x8a8] sm:$0xff] }
  0xf1   :  { %1059 = vmatpush.msra.mxu1 %v826_v49  ;;  %1104 = vmatpush.msra.mxu3 %v573_v50  ;;  %v747_v48 = vld [vmem:[#allocation4 + $0x6f8] sm:$0xff]  ;;  %v557_v49 = vld [vmem:[#allocation4 + $0x108] sm:$0xff] }
  0xf2   :  { %1173 = vmatpush.msrb.mxu2 %v669_v56  ;;  %1129 = vmatpush.msrb.mxu0 %v601_v58  ;;  %v649_v50 = vld [vmem:[#allocation4 + $0x3e8] sm:$0xff]  ;;  %v715_v58 = vld [vmem:[#allocation4 + $0x5f8] sm:$0xff] }
  0xf3   :  { %1060 = vmatpush.msra.mxu1 %v824_v44  ;;  %1021 = vmatmul.f32.vlgmr.msrb.gmra.mxu3 %v2635_v2  ;;  %v745_v56 = vld [vmem:[#allocation4 + $0x6e8] sm:$0xff]  ;;  %v811_v44 = vld [vmem:[#allocation4 + $0x8f8] sm:$0xff] }
  0xf4   :  { %1105 = vmatpush.msra.mxu3 %v571_v59  ;;  %1174 = vmatpush.msrb.mxu2 %v667_v61  ;;  %v647_v59 = vld [vmem:[#allocation4 + $0x3d8] sm:$0xff]  ;;  %v421_v61 = vld [vmem:[#allocation2 + $0x20] sm:$0xf0]  ;;  %v633_v36 = vld [vmem:[#allocation4 + $0x368] sm:$0xff] }
  0xf5   :  { %1061 = vmatpush.msra.mxu1 %v822_v3  ;;  %1130 = vmatpush.msrb.mxu0 %v599_v4  ;;  %v809_v3 = vld [vmem:[#allocation4 + $0x8e8] sm:$0xff] }
  0xf6   :  { %1106 = vmatpush.msra.mxu3 %v569_v8  ;;  %1175 = vmatpush.msrb.mxu2 %v665_v9  ;;  %v645_v4 = vld [vmem:[#allocation4 + $0x3c8] sm:$0xff]  ;;  %v711_v9 = vld [vmem:[#allocation4 + $0x5d8] sm:$0xff] }
  0xf7   :  { %1062 = vmatpush.msra.mxu1 %v820_v10  ;;  %1131 = vmatpush.msrb.mxu0 %v597_v11  ;;  %v741_v8 = vld [vmem:[#allocation4 + $0x6c8] sm:$0xff]  ;;  %v807_v10 = vld [vmem:[#allocation4 + $0x8d8] sm:$0xff]  ;;  %v517_v11 = vrot.slane %v421_v61, 4 }
  0xf8   :  { %1107 = vmatpush.msra.mxu3 %v567_v17  ;;  %1176 = vmatpush.msrb.mxu2 %v663_v18  ;;  %v641_v17 = vld [vmem:[#allocation4 + $0x3a8] sm:$0xff]  ;;  %v719_v61 = vld [vmem:[#allocation4 + $0x618] sm:$0xff] }
  0xf9   :  { %978 = vmatmul.f32.gmra.mxu1 %v2639_v24  ;;  %1132 = vmatpush.msrb.mxu0 %v595_v19  ;;  %v737_v18 = vld [vmem:[#allocation4 + $0x6a8] sm:$0xff]  ;;  %v707_v19 = vld [vmem:[#allocation4 + $0x5b8] sm:$0xff] }
  0xfa   :  { %1063 = vmatpush.msra.mxu1 %v818_v21  ;;  %1108 = vmatpush.msra.mxu3 %v565_v22  ;;  %v803_v21 = vld [vmem:[#allocation4 + $0x8b8] sm:$0xff]  ;;  %v729_v26 = vld [vmem:[#allocation4 + $0x668] sm:$0xff] }
  0xfb   :  { %1177 = vmatpush.msrb.mxu2 %v661_v27  ;;  %1133 = vmatpush.msrb.mxu0 %v593_v28  ;;  %v639_v22 = vld [vmem:[#allocation4 + $0x398] sm:$0xff]  ;;  %v637_v27 = vld [vmem:[#allocation4 + $0x388] sm:$0xff] }
  0xfc   :  { %1064 = vmatpush.msra.mxu1 %v816_v15  ;;  %1024 = vmatmul.f32.gmra.mxu3 %v2643_v25  ;;  %v733_v28 = vld [vmem:[#allocation4 + $0x688] sm:$0xff]  ;;  %v703_v15 = vld [vmem:[#allocation4 + $0x598] sm:$0xff] }
  0xfd   :  { %1109 = vmatpush.msra.mxu3 %v563_v31  ;;  %1178 = vmatpush.msrb.mxu2 %v659_v32  ;;  %v799_v31 = vld [vmem:[#allocation4 + $0x898] sm:$0xff]  ;;  %v629_v43 = vld [vmem:[#allocation4 + $0x348] sm:$0xff] }
  0xfe   :  { %1065 = vmatpush.msra.mxu1 %v814_v34  ;;  %1134 = vmatpush.msrb.mxu0 %v591_v35  ;;  %v635_v32 = vld [vmem:[#allocation4 + $0x378] sm:$0xff]  ;;  %v701_v35 = vld [vmem:[#allocation4 + $0x588] sm:$0xff] }
  0xff   :  { %1110 = vmatpush.msra.mxu3 %v561_v37  ;;  %1179 = vmatpush.msrb.mxu2 %v657_v39  ;;  %v731_v34 = vld [vmem:[#allocation4 + $0x678] sm:$0xff]  ;;  %v725_v45 = vld [vmem:[#allocation4 + $0x648] sm:$0xff] }
 0x100   :  { %1066 = vmatpush.msra.mxu1 %v812_v40  ;;  %1135 = vmatpush.msrb.mxu0 %v589_v41  ;;  %v795_v37 = vld [vmem:[#allocation4 + $0x878] sm:$0xff]  ;;  %v697_v41 = vld [vmem:[#allocation4 + $0x568] sm:$0xff] }
 0x101   :  { %1111 = vmatpush.msra.mxu3 %v559_v42  ;;  %1136 = vmatmul.f32.vlgmr.msrb.gmra.mxu0 %v2580_v33  ;;  %v743_v33 = vld [vmem:[#allocation4 + $0x6d8] sm:$0xff]  ;;  %v793_v42 = vld [vmem:[#allocation4 + $0x868] sm:$0xff] }
 0x102   :  { %1143 = vmatpush.msrb.mxu1 %v651_v46  ;;  %1180 = vmatpush.msrb.mxu2 %v655_v47  ;;  %v631_v39 = vld [vmem:[#allocation4 + $0x358] sm:$0xff]  ;;  %v689_v0 = vld [vmem:[#allocation4 + $0x528] sm:$0xff] }
 0x103   :  { %1212 = vmatpush.msra.mxu0 %v747_v48  ;;  %1067 = vmatmul.f32.vlgmr.msra.gmra.mxu1 %v2648_v51  ;;  %v727_v40 = vld [vmem:[#allocation4 + $0x658] sm:$0xff] }
 0x104   :  { %1112 = vmatpush.msra.mxu3 %v557_v49  ;;  %1144 = vmatpush.msrb.mxu1 %v649_v50  ;;  %v695_v46 = vld [vmem:[#allocation4 + $0x558] sm:$0xff]  ;;  %v693_v50 = vld [vmem:[#allocation4 + $0x548] sm:$0xff] }
 0x105   :  { %1181 = vmatpush.msrb.mxu2 %v653_v53  ;;  %1213 = vmatpush.msra.mxu0 %v745_v56  ;;  %v791_v47 = vld [vmem:[#allocation4 + $0x858] sm:$0xff]  ;;  %v789_v53 = vld [vmem:[#allocation4 + $0x848] sm:$0xff] }
 0x106   :  { %1182 = vmatmul.f32.vlgmr.msrb.gmra.mxu2 %v2591_v60  ;;  %1189 = vmatpush.msrb.mxu3 %v715_v58  ;;  %v739_v60 = vld [vmem:[#allocation4 + $0x6b8] sm:$0xff]  ;;  %v625_v56 = vld [vmem:[#allocation4 + $0x328] sm:$0xff] }
 0x107   :  { %1258 = vmatpush.msra.mxu2 %v811_v44  ;;  %1113 = vmatmul.f32.vlgmr.msra.gmra.mxu3 %v2609_v54  ;;  %v2655_v54 = vsel %vm507_vm3, %v517_v11, %v518_v12  ;;  %v627_v48 = vld [vmem:[#allocation4 + $0x338] sm:$0xff]  ;;  %v721_v58 = vld [vmem:[#allocation4 + $0x628] sm:$0xff] }
 0x108   :  { %1145 = vmatpush.msrb.mxu1 %v647_v59  ;;  %1214 = vmatpush.msra.mxu0 %v743_v33  ;;  %v723_v49 = vld [vmem:[#allocation4 + $0x638] sm:$0xff]  ;;  %v685_v11 = vld [vmem:[#allocation4 + $0x508] sm:$0xff] }
 0x109   :  { %1190 = vmatpush.msrb.mxu3 %v713_v1  ;;  %1259 = vmatpush.msra.mxu2 %v809_v3  ;;  %v691_v44 = vld [vmem:[#allocation4 + $0x538] sm:$0xff]  ;;  %v785_v1 = vld [vmem:[#allocation4 + $0x828] sm:$0xff] }
 0x10a   :  { %1146 = vmatpush.msrb.mxu1 %v645_v4  ;;  %1215 = vmatpush.msra.mxu0 %v741_v8  ;;  %v787_v59 = vld [vmem:[#allocation4 + $0x838] sm:$0xff]  ;;  %v621_v3 = vld [vmem:[#allocation4 + $0x308] sm:$0xff] }
 0x10b   :  { %1191 = vmatpush.msrb.mxu3 %v711_v9  ;;  %1260 = vmatpush.msra.mxu2 %v807_v10  ;;  %v623_v33 = vld [vmem:[#allocation4 + $0x318] sm:$0xff]  ;;  %v717_v4 = vld [vmem:[#allocation4 + $0x608] sm:$0xff] }
 0x10c   :  { %1139 = vmatmul.f32.gmra.mxu0 %v2587_v57  ;;  %1147 = vmatpush.msrb.mxu1 %v643_v14  ;;  %v705_v57 = vld [vmem:[#allocation4 + $0x5a8] sm:$0xff]  ;;  %v687_v8 = vld [vmem:[#allocation4 + $0x518] sm:$0xff] }
 0x10d   :  { %1216 = vmatpush.msra.mxu0 %v739_v60  ;;  %1070 = vmatmul.f32.gmra.mxu1 %v2655_v54  ;;  %v779_v9 = vld [vmem:[#allocation4 + $0x7f8] sm:$0xff]  ;;  %v777_v12 = vld [vmem:[#allocation4 + $0x7e8] sm:$0xff] }
 0x10e   :  { %1192 = vmatpush.msrb.mxu3 %v709_v16  ;;  %1261 = vmatpush.msra.mxu2 %v805_v62  ;;  %v783_v10 = vld [vmem:[#allocation4 + $0x818] sm:$0xff]  ;;  %v781_v14 = vld [vmem:[#allocation4 + $0x808] sm:$0xff] }
 0x10f   :  { %1148 = vmatpush.msrb.mxu1 %v641_v17  ;;  %1217 = vmatpush.msra.mxu0 %v737_v18  ;;  %v843_v60 = vld [vmem:[#allocation4 + $0x9f8] sm:$0xff]  ;;  %v841_v62 = vld [vmem:[#allocation4 + $0x9e8] sm:$0xff] }
 0x110   :  { %1185 = vmatmul.f32.gmra.mxu2 %v2599_v6  ;;  %1193 = vmatpush.msrb.mxu3 %v707_v19  ;;  %v797_v6 = vld [vmem:[#allocation4 + $0x888] sm:$0xff]  ;;  %v775_v16 = vld [vmem:[#allocation4 + $0x7d8] sm:$0xff] }
 0x111   :  { %1262 = vmatpush.msra.mxu2 %v803_v21  ;;  %1116 = vmatmul.f32.gmra.mxu3 %v2618_v23  ;;  %v699_v23 = vld [vmem:[#allocation4 + $0x578] sm:$0xff]  ;;  %v773_v17 = vld [vmem:[#allocation4 + $0x7c8] sm:$0xff] }
 0x112   :  { %1149 = vmatpush.msrb.mxu1 %v639_v22  ;;  %1218 = vmatpush.msra.mxu0 %v735_v63  ;;  %v771_v18 = vld [vmem:[#allocation4 + $0x7b8] sm:$0xff]  ;;  %v769_v19 = vld [vmem:[#allocation4 + $0x7a8] sm:$0xff] }
 0x113   :  { %1194 = vmatpush.msrb.mxu3 %v705_v57  ;;  %1263 = vmatpush.msra.mxu2 %v801_v5  ;;  %v767_v21 = vld [vmem:[#allocation4 + $0x798] sm:$0xff]  ;;  %v765_v22 = vld [vmem:[#allocation4 + $0x788] sm:$0xff] }
 0x114   :  { %1150 = vmatpush.msrb.mxu1 %v637_v27  ;;  %1219 = vmatpush.msra.mxu0 %v733_v28  ;;  %v831_v63 = vld [vmem:[#allocation4 + $0x998] sm:$0xff]  ;;  %v825_v28 = vld [vmem:[#allocation4 + $0x968] sm:$0xff] }
 0x115   :  { %1195 = vmatpush.msrb.mxu3 %v703_v15  ;;  %1264 = vmatpush.msra.mxu2 %v799_v31  ;;  %v763_v57 = vld [vmem:[#allocation4 + $0x778] sm:$0xff]  ;;  %v821_v31 = vld [vmem:[#allocation4 + $0x948] sm:$0xff] }
 0x116   :  { %1151 = vmatpush.msrb.mxu1 %v635_v32  ;;  %1220 = vmatpush.msra.mxu0 %v731_v34  ;;  %v827_v5 = vld [vmem:[#allocation4 + $0x978] sm:$0xff]  ;;  %v753_v32 = vld [vmem:[#allocation4 + $0x728] sm:$0xff] }
 0x117   :  { %1196 = vmatpush.msrb.mxu3 %v701_v35  ;;  %1265 = vmatpush.msra.mxu2 %v797_v6  ;;  %v759_v27 = vld [vmem:[#allocation4 + $0x758] sm:$0xff]  ;;  %v817_v6 = vld [vmem:[#allocation4 + $0x928] sm:$0xff] }
 0x118   :  { %1152 = vmatpush.msrb.mxu1 %v633_v36  ;;  %1221 = vmatpush.msra.mxu0 %v729_v26  ;;  %v823_v15 = vld [vmem:[#allocation4 + $0x958] sm:$0xff]  ;;  %v749_v36 = vld [vmem:[#allocation4 + $0x708] sm:$0xff] }
 0x119   :  { %1197 = vmatpush.msrb.mxu3 %v699_v23  ;;  %1266 = vmatpush.msra.mxu2 %v795_v37  ;;  %v819_v34 = vld [vmem:[#allocation4 + $0x938] sm:$0xff]  ;;  %v813_v23 = vld [vmem:[#allocation4 + $0x908] sm:$0xff] }
 0x11a   :  { %1153 = vmatpush.msrb.mxu1 %v631_v39  ;;  %1222 = vmatpush.msra.mxu0 %v727_v40  ;;  %v751_v35 = vld [vmem:[#allocation4 + $0x718] sm:$0xff]  ;;  %v1380_v40 = vld [vmem:[%s3162_s4 + $0x130] sm:$0xff] }
 0x11b   :  { %1198 = vmatpush.msrb.mxu3 %v697_v41  ;;  %1267 = vmatpush.msra.mxu2 %v793_v42  ;;  %v815_v26 = vld [vmem:[#allocation4 + $0x918] sm:$0xff] }
 0x11c   :  { %1154 = vmatpush.msrb.mxu1 %v629_v43  ;;  %1223 = vmatpush.msra.mxu0 %v725_v45  ;;  %v1381_v39 = vld [vmem:[%s3162_s4 + $0x138] sm:$0xff] }
 0x11d   :  { %1199 = vmatpush.msrb.mxu3 %v695_v46  ;;  %1268 = vmatpush.msra.mxu2 %v791_v47  ;;  %v1377_v45 = vld [vmem:[%s3162_s4 + $0x118] sm:$0xff]  ;;  %v1376_v47 = vld [vmem:[%s3162_s4 + $0x110] sm:$0xff] }
 0x11e   :  { %1155 = vmatpush.msrb.mxu1 %v627_v48  ;;  %1224 = vmatpush.msra.mxu0 %v723_v49 }
 0x11f   :  { %1200 = vmatpush.msrb.mxu3 %v693_v50  ;;  %1269 = vmatpush.msra.mxu2 %v789_v53 }
 0x120   :  { %1156 = vmatpush.msrb.mxu1 %v625_v56  ;;  %1225 = vmatpush.msra.mxu0 %v721_v58  ;;  %v1375_v58 = vld [vmem:[%s3162_s4 + $0x108] sm:$0xff] }
 0x121   :  { %1201 = vmatpush.msrb.mxu3 %v691_v44  ;;  %1270 = vmatpush.msra.mxu2 %v787_v59  ;;  %v1374_v44 = vld [vmem:[%s3162_s4 + $0x100] sm:$0xff] }
 0x122   :  { %1157 = vmatpush.msrb.mxu1 %v623_v33  ;;  %1226 = vmatpush.msra.mxu0 %v719_v61 }
 0x123   :  { %1202 = vmatpush.msrb.mxu3 %v689_v0  ;;  %1271 = vmatpush.msra.mxu2 %v785_v1 }
 0x124   :  { %1158 = vmatpush.msrb.mxu1 %v621_v3  ;;  %1227 = vmatpush.msra.mxu0 %v717_v4 }
 0x125   :  { %1159 = vmatmul.f32.vlgmr.msrb.gmra.mxu1 %v2614_v7  ;;  %1203 = vmatpush.msrb.mxu3 %v687_v8  ;;  %v839_v7 = vld [vmem:[#allocation4 + $0x9d8] sm:$0xff] }
 0x126   :  { %1228 = vmatmul.f32.vlgmr.msra.gmra.mxu0 %v2595_v13  ;;  %1235 = vmatpush.msra.mxu1 %v779_v9  ;;  %v837_v13 = vld [vmem:[#allocation4 + $0x9c8] sm:$0xff] }
 0x127   :  { %1272 = vmatpush.msra.mxu2 %v783_v10  ;;  %1204 = vmatpush.msrb.mxu3 %v685_v11 }
 0x128   :  { %1236 = vmatpush.msra.mxu1 %v777_v12  ;;  %1205 = vmatmul.f32.vlgmr.msrb.gmra.mxu3 %v2631_v55  ;;  %v835_v55 = vld [vmem:[#allocation4 + $0x9b8] sm:$0xff] }
 0x129   :  { %1273 = vmatpush.msra.mxu2 %v781_v14  ;;  %1281 = vmatpush.msra.mxu3 %v843_v60 }
 0x12a   :  { %1274 = vmatmul.f32.vlgmr.msra.gmra.mxu2 %v2607_v52  ;;  %1237 = vmatpush.msra.mxu1 %v775_v16  ;;  %v833_v52 = vld [vmem:[#allocation4 + $0x9a8] sm:$0xff] }
 0x12b   :  { %1282 = vmatpush.msra.mxu3 %v841_v62  ;;  %1442 = vmatpush.msrb.mxu2 %v1381_v39 }
 0x12c   :  { %1238 = vmatpush.msra.mxu1 %v773_v17 }
 0x12d   :  { %1283 = vmatpush.msra.mxu3 %v839_v7  ;;  %1162 = vmatmul.f32.gmra.mxu1 %v2626_v20  ;;  %v829_v20 = vld [vmem:[#allocation4 + $0x988] sm:$0xff] }
 0x12e   :  { %1231 = vmatmul.f32.gmra.mxu0 %v2603_v38  ;;  %1239 = vmatpush.msra.mxu1 %v771_v18  ;;  %v761_v38 = vld [vmem:[#allocation4 + $0x768] sm:$0xff] }
 0x12f   :  { %1284 = vmatpush.msra.mxu3 %v837_v13  ;;  %1443 = vmatpush.msrb.mxu2 %v1380_v40 }
 0x130   :  { %1240 = vmatpush.msra.mxu1 %v769_v19  ;;  %1208 = vmatmul.f32.gmra.mxu3 %v2639_v24  ;;  %v757_v24 = vld [vmem:[#allocation4 + $0x748] sm:$0xff] }
 0x131   :  { %1285 = vmatpush.msra.mxu3 %v835_v55 }
 0x132   :  { %1277 = vmatmul.f32.gmra.mxu2 %v2622_v30  ;;  %1241 = vmatpush.msra.mxu1 %v767_v21  ;;  %v755_v30 = vld [vmem:[#allocation4 + $0x738] sm:$0xff] }
 0x133   :  { %1286 = vmatpush.msra.mxu3 %v833_v52 }
 0x134   :  { %1242 = vmatpush.msra.mxu1 %v765_v22 }
 0x135   :  { %1287 = vmatpush.msra.mxu3 %v831_v63 }
 0x136   :  { %1243 = vmatpush.msra.mxu1 %v763_v57 }
 0x137   :  { %1288 = vmatpush.msra.mxu3 %v829_v20  ;;  %v861_v37 = vpop.f32.mrf.mxu0 }
 0x138   :  { %1244 = vmatpush.msra.mxu1 %v761_v38 }
 0x139   :  { %1289 = vmatpush.msra.mxu3 %v827_v5 }
 0x13a   :  { %1245 = vmatpush.msra.mxu1 %v759_v27 }
 0x13b   :  { %1290 = vmatpush.msra.mxu3 %v825_v28 }
 0x13c   :  { %1246 = vmatpush.msra.mxu1 %v757_v24 }
 0x13d   :  { %1291 = vmatpush.msra.mxu3 %v823_v15 }
 0x13e   :  { %1247 = vmatpush.msra.mxu1 %v755_v30 }
 0x13f   :  { %1292 = vmatpush.msra.mxu3 %v821_v31 }
 0x140   :  { %1248 = vmatpush.msra.mxu1 %v753_v32 }
 0x141   :  { %1293 = vmatpush.msra.mxu3 %v819_v34  ;;  %v907_v42 = vpop.f32.mrf.mxu2 }
 0x142   :  { %1249 = vmatpush.msra.mxu1 %v751_v35 }
 0x143   :  { %1294 = vmatpush.msra.mxu3 %v817_v6 }
 0x144   :  { %1250 = vmatpush.msra.mxu1 %v749_v36 }
 0x145   :  { %1251 = vmatmul.f32.vlgmr.msra.gmra.mxu1 %v2635_v2  ;;  %1295 = vmatpush.msra.mxu3 %v815_v26  ;;  %v864_v2 = vpop.f32.mrf.mxu0 }
 0x147   :  { %1296 = vmatpush.msra.mxu3 %v813_v23 }
 0x148   :  { %1297 = vmatmul.f32.vlgmr.msra.gmra.mxu3 %v2648_v51  ;;  %v1378_v51 = vld [vmem:[%s3162_s4 + $0x120] sm:$0xff] }
 0x14b   :  { %v910_v49 = vpop.f32.mrf.mxu2 }
 0x14d   :  { %1254 = vmatmul.f32.gmra.mxu1 %v2643_v25  ;;  %v1379_v25 = vld [vmem:[%s3162_s4 + $0x128] sm:$0xff]  ;;  %v953_v46 = vpop.f32.mrf.mxu0 }
 0x14e   :  { %1444 = vmatpush.msrb.mxu2 %v1379_v25 }
 0x150   :  { %1300 = vmatmul.f32.gmra.mxu3 %v2655_v54  ;;  %1445 = vmatpush.msrb.mxu2 %v1378_v51 }
 0x152   :  { %1446 = vmatpush.msrb.mxu2 %v1377_v45 }
 0x153   :  { %v999_v1 = vpop.f32.mrf.mxu2 }
 0x154   :  { %1447 = vmatpush.msrb.mxu2 %v1376_v47 }
 0x155   :  { %v956_v33 = vpop.f32.mrf.mxu0 }
 0x156   :  { %1448 = vmatpush.msrb.mxu2 %v1375_v58  ;;  %v1372_v58 = vld [vmem:[%s3162_s4 + $0xf0] sm:$0xff] }
 0x158   :  { %1449 = vmatpush.msrb.mxu2 %v1374_v44  ;;  %v1355_v44 = vld [vmem:[%s3162_s4 + $0x68] sm:$0xff] }
 0x15a   :  { %v884_v41 = vpop.f32.mrf.mxu1 }
 0x15b   :  { %v885_v48 = vadd.f32 %v884_v41, %v861_v37  ;;  %v1002_v16 = vpop.f32.mrf.mxu2 }
 0x15d   :  { %v908_v50 = vadd.f32 %v907_v42, %v885_v48  ;;  %v1045_v12 = vpop.f32.mrf.mxu0 }
 0x162   :  { %v887_v43 = vpop.f32.mrf.mxu1 }
 0x163   :  { %v888_v61 = vadd.f32 %v887_v43, %v864_v2  ;;  %v1091_v52 = vpop.f32.mrf.mxu2 }
 0x164   :  { %v930_v54 = vpop.f32.mrf.mxu3 }
 0x165   :  { %v931_v59 = vadd.f32 %v930_v54, %v908_v50  ;;  %v911_v9 = vadd.f32 %v910_v49, %v888_v61  ;;  %v1048_v55 = vpop.f32.mrf.mxu0  ;;  %v1357_v50 = vld [vmem:[%s3162_s4 + $0x78] sm:$0xff]  ;;  %v1370_v61 = vld [vmem:[%s3162_s4 + $0xe0] sm:$0xff] }
 0x166   :  { %1388 = vmatpush.msrb.mxu0 %v1357_v50 }
 0x167   :  { %v954_v0 = vadd.f32 %v953_v46, %v931_v59  ;;  %v1371_v59 = vld [vmem:[%s3162_s4 + $0xe8] sm:$0xff] }
 0x16d   :  { %v976_v53 = vpop.f32.mrf.mxu1  ;;  %v933_v56 = vpop.f32.mrf.mxu3 }
 0x16e   :  { %v977_v3 = vadd.f32 %v976_v53, %v954_v0  ;;  %v934_v10 = vadd.f32 %v933_v56, %v911_v9  ;;  %v1373_v53 = vld [vmem:[%s3162_s4 + $0xf8] sm:$0xff]  ;;  %v1356_v56 = vld [vmem:[%s3162_s4 + $0x70] sm:$0xff]  ;;  %v1367_v9 = vld [vmem:[%s3162_s4 + $0xc8] sm:$0xff] }
 0x16f   :  { %v1094_v32 = vpop.f32.mrf.mxu2  ;;  %1411 = vmatpush.msrb.mxu1 %v1373_v53  ;;  %1389 = vmatpush.msrb.mxu0 %v1356_v56  ;;  %v1353_v0 = vld [vmem:[%s3162_s4 + $0x58] sm:$0xff]  ;;  %v1916_v56 = vld [vmem:[%s3162_s4 + $0x270] sm:$0xff] }
 0x170   :  { %v1000_v11 = vadd.f32 %v999_v1, %v977_v3  ;;  %v957_v60 = vadd.f32 %v956_v33, %v934_v10  ;;  %v1354_v33 = vld [vmem:[%s3162_s4 + $0x60] sm:$0xff]  ;;  %v1369_v1 = vld [vmem:[%s3162_s4 + $0xd8] sm:$0xff]  ;;  %v1352_v3 = vld [vmem:[%s3162_s4 + $0x50] sm:$0xff] }
 0x171   :  { %1412 = vmatpush.msrb.mxu1 %v1372_v58  ;;  %1390 = vmatpush.msrb.mxu0 %v1355_v44  ;;  %v1350_v10 = vld [vmem:[%s3162_s4 + $0x40] sm:$0xff]  ;;  %v1917_v53 = vld [vmem:[%s3162_s4 + $0x278] sm:$0xff]  ;;  %v1915_v58 = vld [vmem:[%s3162_s4 + $0x268] sm:$0xff] }
 0x172   :  { %v1914_v44 = vld [vmem:[%s3162_s4 + $0x260] sm:$0xff] }
 0x173   :  { %1413 = vmatpush.msrb.mxu1 %v1371_v59  ;;  %1391 = vmatpush.msrb.mxu0 %v1354_v33 }
 0x175   :  { %1414 = vmatpush.msrb.mxu1 %v1370_v61  ;;  %1392 = vmatpush.msrb.mxu0 %v1353_v0 }
 0x176   :  { %v979_v4 = vpop.f32.mrf.mxu1  ;;  %v1022_v8 = vpop.f32.mrf.mxu3 }
 0x177   :  { %v1023_v14 = vadd.f32 %v1022_v8, %v1000_v11  ;;  %v980_v62 = vadd.f32 %v979_v4, %v957_v60  ;;  %v1368_v4 = vld [vmem:[%s3162_s4 + $0xd0] sm:$0xff]  ;;  %1415 = vmatpush.msrb.mxu1 %v1369_v1  ;;  %v1351_v8 = vld [vmem:[%s3162_s4 + $0x48] sm:$0xff]  ;;  %1393 = vmatpush.msrb.mxu0 %v1352_v3  ;;  %v1366_v11 = vld [vmem:[%s3162_s4 + $0xc0] sm:$0xff] }
 0x178   :  { %v1365_v60 = vld [vmem:[%s3162_s4 + $0xb8] sm:$0xff] }
 0x179   :  { %v1046_v17 = vadd.f32 %v1045_v12, %v1023_v14  ;;  %v1003_v19 = vadd.f32 %v1002_v16, %v980_v62  ;;  %1416 = vmatpush.msrb.mxu1 %v1368_v4  ;;  %1394 = vmatpush.msrb.mxu0 %v1351_v8  ;;  %v1349_v14 = vld [vmem:[%s3162_s4 + $0x38] sm:$0xff] }
 0x17b   :  { %1417 = vmatpush.msrb.mxu1 %v1367_v9  ;;  %1395 = vmatpush.msrb.mxu0 %v1350_v10 }
 0x17d   :  { %1418 = vmatpush.msrb.mxu1 %v1366_v11  ;;  %1396 = vmatpush.msrb.mxu0 %v1349_v14 }
 0x17e   :  { %v1137_v30 = vpop.f32.mrf.mxu0 }
 0x17f   :  { %v1025_v18 = vpop.f32.mrf.mxu3  ;;  %1419 = vmatpush.msrb.mxu1 %v1365_v60 }
 0x180   :  { %v1068_v7 = vpop.f32.mrf.mxu1  ;;  %v1026_v21 = vadd.f32 %v1025_v18, %v1003_v19  ;;  %v1347_v19 = vld [vmem:[%s3162_s4 + $0x28] sm:$0xff] }
 0x181   :  { %v2704_v13 = vadd.f32 %v1068_v7, %v1046_v17  ;;  %v1348_v17 = vld [vmem:[%s3162_s4 + $0x30] sm:$0xff] }
 0x182   :  { %v1049_v22 = vadd.f32 %v1048_v55, %v1026_v21  ;;  %v1364_v7 = vld [vmem:[%s3162_s4 + $0xb0] sm:$0xff]  ;;  %v1363_v55 = vld [vmem:[%s3162_s4 + $0xa8] sm:$0xff]  ;;  %1397 = vmatpush.msrb.mxu0 %v1348_v17  ;;  %v1346_v21 = vld [vmem:[%s3162_s4 + $0x20] sm:$0xff] }
 0x183   :  { %1310 = vst.msk [vmem:[#allocation3 + $0x2] sm:$0xff] %vm1309_vm5, %v2704_v13  ;;  %1420 = vmatpush.msrb.mxu1 %v1364_v7 }
 0x184   :  { %1398 = vmatpush.msrb.mxu0 %v1347_v19 }
 0x185   :  { %1421 = vmatpush.msrb.mxu1 %v1363_v55 }
 0x186   :  { %1399 = vmatpush.msrb.mxu0 %v1346_v21 }
 0x189   :  { %v1140_v39 = vpop.f32.mrf.mxu0  ;;  %v1183_v41 = vpop.f32.mrf.mxu2 }
 0x18a   :  { %v1071_v63 = vpop.f32.mrf.mxu1  ;;  %v1114_v57 = vpop.f32.mrf.mxu3  ;;  %v1320_v20 = vld [vmem:[#allocation3 + $0x4] sm:$0xff] }
 0x18b   :  { %v1314_v38 = vld [vmem:[#allocation3 + $0x1] sm:$0xff]  ;;  %v2708_v27 = vadd.f32 %v1071_v63, %v1049_v22  ;;  %v1115_v28 = vadd.f32 %v1114_v57, %v1091_v52  ;;  %1876 = vmatmul.msk.f32.vlgmr.msrb.gmra.mxu2 %vm1309_vm5, %v1320_v20  ;;  %v1345_v22 = vld [vmem:[%s3162_s4 + $0x18] sm:$0xff]  ;;  %v1344_v57 = vld [vmem:[%s3162_s4 + $0x10] sm:$0xff] }
 0x18c   :  { %v1318_v5 = vld [vmem:[#allocation3 + $0x3] sm:$0xff]  ;;  %v1361_v63 = vld [vmem:[%s3162_s4 + $0x98] sm:$0xff]  ;;  %v1360_v20 = vld [vmem:[%s3162_s4 + $0x90] sm:$0xff]  ;;  %1400 = vmatpush.msrb.mxu0 %v1345_v22 }
 0x18d   :  { %1469 = vst.msk [vmem:[#allocation3 + $0xa] sm:$0x3] %vm1304_vm4, %v2083_v29  ;;  %v1977_v24 = vpack.i.bf16 %v1318_v5, %v1314_v38  ;;  %v2713_v15 = vld [vmem:[#allocation3] sm:$0xff]  ;;  %v1138_v31 = vadd.f32 %v1137_v30, %v1115_v28  ;;  %v1343_v38 = vld [vmem:[%s3162_s4 + $0x8] sm:$0xff]  ;;  %v1912_v22 = vld [vmem:[%s3162_s4 + $0x250] sm:$0xff] }
 0x18e   :  { %1467 = vst.msk [vmem:[#allocation3] sm:$0x3] %vm1304_vm4, %v2083_v29  ;;  %v1362_v52 = vld [vmem:[%s3162_s4 + $0xa0] sm:$0xff]  ;;  %1401 = vmatpush.msrb.mxu0 %v1344_v57  ;;  %v1359_v5 = vld [vmem:[%s3162_s4 + $0x88] sm:$0xff] }
 0x18f   :  { %1311 = vst.msk [vmem:[#allocation3 + $0x12] sm:$0xff] %vm1309_vm5, %v2708_v27  ;;  %1978 = vrot.lane.b32.xlu0 %v1977_v24, %s2084_s30  ;;  %1422 = vmatpush.msrb.mxu1 %v1362_v52  ;;  %v1342_v28 = vld [vmem:[%s3162_s4] sm:$0xff]  ;;  %v1913_v52 = vld [vmem:[%s3162_s4 + $0x258] sm:$0xff] }
 0x190   :  { %1402 = vmatpush.msrb.mxu0 %v1343_v38  ;;  %v1358_v24 = vld [vmem:[%s3162_s4 + $0x80] sm:$0xff]  ;;  %v1909_v38 = vld [vmem:[%s3162_s4 + $0x238] sm:$0xff] }
 0x191   :  { %1423 = vmatpush.msrb.mxu1 %v1361_v63  ;;  %v1911_v63 = vld [vmem:[%s3162_s4 + $0x248] sm:$0xff]  ;;  %v1910_v57 = vld [vmem:[%s3162_s4 + $0x240] sm:$0xff]  ;;  %1581 = vmatpush.msra.mxu2 %v1909_v38 }
 0x192   :  { %1403 = vmatpush.msrb.mxu0 %v1342_v28  ;;  %v1908_v28 = vld [vmem:[%s3162_s4 + $0x230] sm:$0xff]  ;;  %v1957_v38 = vld [vmem:[%s3162_s4 + $0x3a8] sm:$0xff] }
 0x193   :  { %v1186_v45 = vpop.f32.mrf.mxu2  ;;  %1424 = vmatpush.msrb.mxu1 %v1360_v20  ;;  %v1893_v20 = vld [vmem:[%s3162_s4 + $0x1b8] sm:$0xff]  ;;  %1582 = vmatpush.msra.mxu2 %v1908_v28 }
 0x194   :  { %v1117_v34 = vpop.f32.mrf.mxu3  ;;  %1612 = vmatpush.msra.mxu0 %v1917_v53  ;;  %1558 = vmatpush.msrb.mxu3 %v1893_v20  ;;  %v1882_v53 = vld [vmem:[%s3162_s4 + $0x160] sm:$0xff]  ;;  %v1958_v20 = vld [vmem:[%s3162_s4 + $0x3b0] sm:$0xff]  ;;  %v1955_v28 = vld [vmem:[%s3162_s4 + $0x398] sm:$0xff] }
 0x195   :  { %v1118_v26 = vadd.f32 %v1117_v34, %v1094_v32  ;;  %1425 = vmatpush.msrb.mxu1 %v1359_v5  ;;  %v1316_v34 = vld [vmem:[#allocation3 + $0x2] sm:$0xff]  ;;  %v1892_v5 = vld [vmem:[%s3162_s4 + $0x1b0] sm:$0xff] }
 0x196   :  { %v1321_v35 = vld [vmem:[#allocation3 + $0x14] sm:$0xff]  ;;  %1613 = vmatpush.msra.mxu0 %v1916_v56  ;;  %1559 = vmatpush.msrb.mxu3 %v1892_v5  ;;  %v1898_v56 = vld [vmem:[%s3162_s4 + $0x1e0] sm:$0xff] }
 0x197   :  { %v1315_v6 = vld [vmem:[#allocation3 + $0x11] sm:$0xff]  ;;  %1877 = vmatmul.msk.f32.gmra.mxu2 %vm1309_vm5, %v1321_v35  ;;  %v1141_v40 = vadd.f32 %v1140_v39, %v1118_v26  ;;  %1426 = vmatpush.msrb.mxu1 %v1358_v24  ;;  %v1891_v24 = vld [vmem:[%s3162_s4 + $0x1a8] sm:$0xff]  ;;  %v1956_v5 = vld [vmem:[%s3162_s4 + $0x3a0] sm:$0xff] }
 0x198   :  { %v1319_v36 = vld [vmem:[#allocation3 + $0x13] sm:$0xff]  ;;  %1614 = vmatpush.msra.mxu0 %v1915_v58  ;;  %1560 = vmatpush.msrb.mxu3 %v1891_v24 }
 0x199   :  { %1470 = vst.msk [vmem:[#allocation3 + $0x1a] sm:$0x3] %vm1304_vm4, %v2083_v29  ;;  %v1982_v23 = vpack.i.bf16 %v1319_v36, %v1315_v6  ;;  %v2723_v37 = vld [vmem:[#allocation3 + $0x10] sm:$0xff] }
 0x19a   :  { %1468 = vst.msk [vmem:[#allocation3 + $0x10] sm:$0x3] %vm1304_vm4, %v2083_v29  ;;  %v1317_v39 = vld [vmem:[#allocation3 + $0x12] sm:$0xff]  ;;  %1615 = vmatpush.msra.mxu0 %v1914_v44 }
 0x19b   :  { %1983 = vrot.lane.b32.xlu0 %v1982_v23, %s2084_s30 }
 0x19c   :  { %1616 = vmatpush.msra.mxu0 %v1913_v52 }
 0x19e   :  { %1617 = vmatpush.msra.mxu0 %v1912_v22 }
 0x1a0   :  { %1618 = vmatpush.msra.mxu0 %v1911_v63  ;;  %v1959_v63 = vld [vmem:[%s3162_s4 + $0x3b8] sm:$0xff] }
 0x1a2   :  { %v1160_v2 = vpop.f32.mrf.mxu1  ;;  %1619 = vmatpush.msra.mxu0 %v1910_v57 }
 0x1a3   :  { %v1161_v42 = vadd.f32 %v1160_v2, %v1138_v31  ;;  %v1229_v47 = vpop.f32.mrf.mxu0 }
 0x1a5   :  { %v1184_v43 = vadd.f32 %v1183_v41, %v1161_v42 }
 0x1aa   :  { %v1163_v25 = vpop.f32.mrf.mxu1 }
 0x1ab   :  { %v1164_v51 = vadd.f32 %v1163_v25, %v1141_v40  ;;  %v1206_v54 = vpop.f32.mrf.mxu3  ;;  %v2834_v2 = vpop.f32.mrf.mxu0 }
 0x1ac   :  { %v1207_v46 = vadd.f32 %v1206_v54, %v1184_v43 }
 0x1ad   :  { %v2728_v48 = vadd.f32 %v1186_v45, %v1164_v51  ;;  %v1275_v62 = vpop.f32.mrf.mxu2 }
 0x1ae   :  { %v1230_v49 = vadd.f32 %v1229_v47, %v1207_v46 }
 0x1b3   :  { %v1209_v57 = vpop.f32.mrf.mxu3 }
 0x1c2   :  { %v1252_v12 = vpop.f32.mrf.mxu1 }
 0x1c3   :  { %v1253_v16 = vadd.f32 %v1252_v12, %v1230_v49 }
 0x1c5   :  { %v2790_v18 = vadd.f32 %v1275_v62, %v1253_v16 }
 0x1ca   :  { %v2836_v42 = vpop.f32.mrf.mxu1 }
 0x1cb   :  { %v1298_v24 = vpop.f32.mrf.mxu3 }
 0x201   :  { %v1979_v30 = vpop.permute.xlu0 %1978 }
 0x202   :  { %v1981_v31 = vunpack.i.h.bf16 %v1979_v30  ;;  %v1980_v32 = vunpack.i.l.bf16 %v1979_v30  ;;  %v1907_v30 = vld [vmem:[%s3162_s4 + $0x228] sm:$0xff] }
 0x203   :  { %1583 = vmatpush.msra.mxu2 %v1907_v30  ;;  %v1954_v30 = vld [vmem:[%s3162_s4 + $0x390] sm:$0xff] }
 0x204   :  { %v1338_v35 = vsel %vm1309_vm5, %v2713_v15, %v1980_v32  ;;  %v1340_v6 = vsel %vm1309_vm5, %v1316_v34, %v1981_v31  ;;  %v2838_v15 = vpop.f32.mrf.mxu2  ;;  %v1890_v31 = vld [vmem:[%s3162_s4 + $0x1a0] sm:$0xff]  ;;  %v1889_v34 = vld [vmem:[%s3162_s4 + $0x198] sm:$0xff] }
 0x205   :  { %1404 = vmatmul.f32.vlgmr.msrb.gmra.mxu0 %v1338_v35  ;;  %1427 = vmatmul.f32.vlgmr.msrb.gmra.mxu1 %v1340_v6  ;;  %v1906_v32 = vld [vmem:[%s3162_s4 + $0x220] sm:$0xff]  ;;  %v1905_v35 = vld [vmem:[%s3162_s4 + $0x218] sm:$0xff]  ;;  %v1888_v6 = vld [vmem:[%s3162_s4 + $0x190] sm:$0xff] }
 0x206   :  { %1561 = vmatpush.msrb.mxu3 %v1890_v31  ;;  %1584 = vmatpush.msra.mxu2 %v1906_v32  ;;  %v1953_v31 = vld [vmem:[%s3162_s4 + $0x388] sm:$0xff]  ;;  %v1952_v32 = vld [vmem:[%s3162_s4 + $0x380] sm:$0xff] }
 0x207   :  { %1766 = vmatpush.msrb.mxu0 %v1959_v63 }
 0x208   :  { %1562 = vmatpush.msrb.mxu3 %v1889_v34  ;;  %1585 = vmatpush.msra.mxu2 %v1905_v35  ;;  %v1301_v34 = vpop.f32.mrf.mxu3  ;;  %v1951_v35 = vld [vmem:[%s3162_s4 + $0x378] sm:$0xff] }
 0x209   :  { %1767 = vmatpush.msrb.mxu0 %v1958_v20 }
 0x20a   :  { %1563 = vmatpush.msrb.mxu3 %v1888_v6  ;;  %v1950_v6 = vld [vmem:[%s3162_s4 + $0x370] sm:$0xff] }
 0x20b   :  { %1768 = vmatpush.msrb.mxu0 %v1957_v38 }
 0x20d   :  { %v1984_v36 = vpop.permute.xlu0 %1983  ;;  %1769 = vmatpush.msrb.mxu0 %v1956_v5 }
 0x20e   :  { %v1986_v26 = vunpack.i.h.bf16 %v1984_v36  ;;  %v1985_v23 = vunpack.i.l.bf16 %v1984_v36  ;;  %v1451_v54 = vpop.f32.mrf.mxu2  ;;  %v1904_v36 = vld [vmem:[%s3162_s4 + $0x210] sm:$0xff] }
 0x20f   :  { %1586 = vmatpush.msra.mxu2 %v1904_v36  ;;  %1770 = vmatpush.msrb.mxu0 %v1955_v28  ;;  %v1949_v36 = vld [vmem:[%s3162_s4 + $0x368] sm:$0xff] }
 0x210   :  { %v1339_v40 = vsel %vm1309_vm5, %v2723_v37, %v1985_v23  ;;  %v1341_v41 = vsel %vm1309_vm5, %v1317_v39, %v1986_v26  ;;  %v1887_v26 = vld [vmem:[%s3162_s4 + $0x188] sm:$0xff] }
 0x211   :  { %1407 = vmatmul.f32.gmra.mxu0 %v1339_v40  ;;  %1430 = vmatmul.f32.gmra.mxu1 %v1341_v41  ;;  %v1903_v23 = vld [vmem:[%s3162_s4 + $0x208] sm:$0xff]  ;;  %v1886_v40 = vld [vmem:[%s3162_s4 + $0x180] sm:$0xff] }
 0x212   :  { %v1902_v41 = vld [vmem:[%s3162_s4 + $0x200] sm:$0xff]  ;;  %1564 = vmatpush.msrb.mxu3 %v1887_v26  ;;  %1587 = vmatpush.msra.mxu2 %v1903_v23 }
 0x213   :  { %1771 = vmatpush.msrb.mxu0 %v1954_v30  ;;  %v1948_v26 = vld [vmem:[%s3162_s4 + $0x360] sm:$0xff] }
 0x214   :  { %1565 = vmatpush.msrb.mxu3 %v1886_v40  ;;  %1588 = vmatpush.msra.mxu2 %v1902_v41  ;;  %v1210_v40 = vadd.f32 %v1209_v57, %v2728_v48  ;;  %v1923_v57 = vld [vmem:[%s3162_s4 + $0x298] sm:$0xff] }
 0x215   :  { %1772 = vmatpush.msrb.mxu0 %v1953_v31 }
 0x217   :  { %1773 = vmatpush.msrb.mxu0 %v1952_v32 }
 0x21a   :  { %v1454_v49 = vpop.f32.mrf.mxu2 }
 0x282   :  { %v1405_v43 = vpop.f32.mrf.mxu0  ;;  %v1428_v25 = vpop.f32.mrf.mxu1 }
 0x283   :  { %v1429_v51 = vadd.f32 %v1428_v25, %v1405_v43  ;;  %v1885_v43 = vld [vmem:[%s3162_s4 + $0x178] sm:$0xff] }
 0x284   :  { %v1901_v25 = vld [vmem:[%s3162_s4 + $0x1f8] sm:$0xff]  ;;  %1566 = vmatpush.msrb.mxu3 %v1885_v43 }
 0x285   :  { %v1452_v45 = vadd.f32 %v1451_v54, %v1429_v51  ;;  %v1884_v51 = vld [vmem:[%s3162_s4 + $0x170] sm:$0xff]  ;;  %1589 = vmatpush.msra.mxu2 %v1901_v25  ;;  %v1947_v43 = vld [vmem:[%s3162_s4 + $0x358] sm:$0xff] }
 0x286   :  { %v1900_v54 = vld [vmem:[%s3162_s4 + $0x1f0] sm:$0xff]  ;;  %1567 = vmatpush.msrb.mxu3 %v1884_v51  ;;  %v3032_v51 = vadd.f32 %v1298_v24, %v2790_v18  ;;  %v1944_v18 = vld [vmem:[%s3162_s4 + $0x340] sm:$0xff]  ;;  %v1921_v24 = vld [vmem:[%s3162_s4 + $0x288] sm:$0xff] }
 0x287   :  { %1459 = vrot.lane.b32.xlu1 %v1452_v45, %s2084_s30  ;;  %v1883_v45 = vld [vmem:[%s3162_s4 + $0x168] sm:$0xff]  ;;  %1590 = vmatpush.msra.mxu2 %v1900_v54 }
 0x288   :  { %1568 = vmatpush.msrb.mxu3 %v1883_v45  ;;  %v1946_v45 = vld [vmem:[%s3162_s4 + $0x350] sm:$0xff] }
 0x28a   :  { %1569 = vmatpush.msrb.mxu3 %v1882_v53 }
 0x28e   :  { %v1408_v46 = vpop.f32.mrf.mxu0  ;;  %v1431_v47 = vpop.f32.mrf.mxu1 }
 0x28f   :  { %v1432_v37 = vadd.f32 %v1431_v47, %v1408_v46  ;;  %v1899_v46 = vld [vmem:[%s3162_s4 + $0x1e8] sm:$0xff] }
 0x290   :  { %1591 = vmatpush.msra.mxu2 %v1899_v46  ;;  %v1233_v46 = vadd.f32 %v2834_v2, %v1210_v40  ;;  %v1943_v2 = vld [vmem:[%s3162_s4 + $0x338] sm:$0xff] }
 0x291   :  { %v1455_v50 = vadd.f32 %v1454_v49, %v1432_v37 }
 0x292   :  { %1592 = vmatpush.msra.mxu2 %v1898_v56 }
 0x293   :  { %1461 = vrot.lane.b32.xlu1 %v1455_v50, %s2084_s30 }
 0x2f9   :  { %v1460_v59 = vpop.permute.xlu1 %1459 }
 0x2fa   :  { %v1465_v33 = vadd.f32 %v1460_v59, %v2704_v13  ;;  %v1881_v59 = vld [vmem:[%s3162_s4 + $0x158] sm:$0xff] }
 0x2fb   :  { %1570 = vmatpush.msrb.mxu3 %v1881_v59 }
 0x2fc   :  { %v1791_v61 = vsel %vm1309_vm5, %v2704_v13, %v1465_v33  ;;  %1473 = vrot.lane.b32.xlu2 %v1465_v33, %s2084_s30  ;;  %v1897_v33 = vld [vmem:[%s3162_s4 + $0x1d8] sm:$0xff] }
 0x2fd   :  { %1795 = vst [vmem:[#allocation7] sm:$0xff] %v1791_v61  ;;  %v1813_v4 = vmul.f32 %v1791_v61, %v1791_v61  ;;  %1593 = vmatpush.msra.mxu2 %v1897_v33  ;;  %v1941_v33 = vld [vmem:[%s3162_s4 + $0x328] sm:$0xff] }
 0x305   :  { %v1462_v0 = vpop.permute.xlu1 %1461 }
 0x306   :  { %v1466_v1 = vadd.f32 %v1462_v0, %v2708_v27  ;;  %v1896_v0 = vld [vmem:[%s3162_s4 + $0x1d0] sm:$0xff] }
 0x307   :  { %1594 = vmatpush.msra.mxu2 %v1896_v0 }
 0x308   :  { %v1792_v3 = vsel %vm1309_vm5, %v2708_v27, %v1466_v1  ;;  %1475 = vrot.lane.b32.xlu2 %v1466_v1, %s2084_s30 }
 0x309   :  { %1797 = vst [vmem:[#allocation7 + $0x10] sm:$0xff] %v1792_v3  ;;  %v1799_v8 = vadd.f32 %v1792_v3, %v1791_v61  ;;  %v1815_v9 = vmul.f32 %v1792_v3, %v1792_v3  ;;  %v1880_v61 = vld [vmem:[%s3162_s4 + $0x150] sm:$0xff] }
 0x30a   :  { %1571 = vmatpush.msrb.mxu3 %v1880_v61 }
 0x30b   :  { %v1800_v10 = vrot.slane %v1799_v8, 4  ;;  %v1817_v11 = vadd.f32 %v1815_v9, %v1813_v4 }
 0x30d   :  { %v1801_v12 = vadd.f32 %v1800_v10, %v1799_v8  ;;  %v1818_v14 = vrot.slane %v1817_v11, 4  ;;  %v1879_v10 = vld [vmem:[%s3162_s4 + $0x148] sm:$0xff] }
 0x30e   :  { %1572 = vmatpush.msrb.mxu3 %v1879_v10 }
 0x30f   :  { %v1802_v13 = vrot.slane %v1801_v12, 2  ;;  %v1819_v60 = vadd.f32 %v1818_v14, %v1817_v11  ;;  %v1895_v11 = vld [vmem:[%s3162_s4 + $0x1c8] sm:$0xff] }
 0x310   :  { %1595 = vmatpush.msra.mxu2 %v1895_v11 }
 0x311   :  { %v1803_v16 = vadd.f32 %v1802_v13, %v1801_v12  ;;  %v1820_v62 = vrot.slane %v1819_v60, 2  ;;  %v1878_v12 = vld [vmem:[%s3162_s4 + $0x140] sm:$0xff] }
 0x312   :  { %1573 = vmatpush.msrb.mxu3 %v1878_v12 }
 0x313   :  { %v1804_v17 = vrot.slane %v1803_v16, 1  ;;  %v1821_v7 = vadd.f32 %v1820_v62, %v1819_v60 }
 0x314   :  { %1735 = vmatpush.msra.mxu3 %v1951_v35 }
 0x315   :  { %v1822_v19 = vrot.slane %v1821_v7, 1  ;;  %v1805_v55 = vadd.f32 %v1804_v17, %v1803_v16 }
 0x316   :  { %1736 = vmatpush.msra.mxu3 %v1950_v6 }
 0x317   :  { %v1823_v27 = vadd.f32 %v1822_v19, %v1821_v7 }
 0x318   :  { %1737 = vmatpush.msra.mxu3 %v1949_v36 }
 0x319   :  { %v2863_v21 = vsel %vm1831_vm6, %v1805_v55, %v1823_v27 }
 0x31a   :  { %1738 = vmatpush.msra.mxu3 %v1948_v26 }
 0x31c   :  { %1739 = vmatpush.msra.mxu3 %v1947_v43 }
 0x31e   :  { %1740 = vmatpush.msra.mxu3 %v1946_v45 }
 0x356   :  { %v1474_v39 = vpop.permute.xlu2 %1473 }
 0x357   :  { %1479 = vst.msk [vmem:[#allocation3 + $0x2] sm:$0xff] %vm1309_vm5, %v1474_v39 }
 0x35e   :  { %v1489_v47 = vld [vmem:[#allocation3 + $0x4] sm:$0xff] }
 0x35f   :  { %v1483_v37 = vld [vmem:[#allocation3 + $0x1] sm:$0xff]  ;;  %1918 = vmatmul.msk.f32.vlgmr.msra.gmra.mxu0 %vm1309_vm5, %v1489_v47 }
 0x360   :  { %v1487_v49 = vld [vmem:[#allocation3 + $0x3] sm:$0xff] }
 0x361   :  { %1631 = vst.msk [vmem:[#allocation3 + $0xa] sm:$0x3] %vm1304_vm4, %v2083_v29  ;;  %v1987_v50 = vpack.i.bf16 %v1487_v49, %v1483_v37  ;;  %v1481_v58 = vld [vmem:[#allocation3] sm:$0xff]  ;;  %v1945_v47 = vld [vmem:[%s3162_s4 + $0x348] sm:$0xff]  ;;  %v1256_v37 = vadd.f32 %v2836_v42, %v1233_v46  ;;  %v1942_v42 = vld [vmem:[%s3162_s4 + $0x330] sm:$0xff] }
 0x362   :  { %v1476_v44 = vpop.permute.xlu2 %1475  ;;  %1629 = vst.msk [vmem:[#allocation3] sm:$0x3] %vm1304_vm4, %v2083_v29  ;;  %v1485_v16 = vld [vmem:[#allocation3 + $0x2] sm:$0xff]  ;;  %1741 = vmatpush.msra.mxu3 %v1945_v47 }
 0x363   :  { %1480 = vst.msk [vmem:[#allocation3 + $0x12] sm:$0xff] %vm1309_vm5, %v1476_v44  ;;  %1988 = vrot.lane.b32.xlu0 %v1987_v50, %s2084_s30  ;;  %v1279_v53 = vadd.f32 %v2838_v15, %v1256_v37  ;;  %v1940_v15 = vld [vmem:[%s3162_s4 + $0x320] sm:$0xff] }
 0x364   :  { %1742 = vmatpush.msra.mxu3 %v1944_v18 }
 0x365   :  { %v3057_v44 = vadd.f32 %v1301_v34, %v1279_v53 }
 0x366   :  { %1743 = vmatpush.msra.mxu3 %v1943_v2 }
 0x368   :  { %1744 = vmatpush.msra.mxu3 %v1942_v42 }
 0x36a   :  { %v1490_v1 = vld [vmem:[#allocation3 + $0x14] sm:$0xff]  ;;  %1745 = vmatpush.msra.mxu3 %v1941_v33 }
 0x36b   :  { %v1484_v3 = vld [vmem:[#allocation3 + $0x11] sm:$0xff]  ;;  %1919 = vmatmul.msk.f32.gmra.mxu0 %vm1309_vm5, %v1490_v1 }
 0x36c   :  { %v1488_v4 = vld [vmem:[#allocation3 + $0x13] sm:$0xff]  ;;  %1746 = vmatpush.msra.mxu3 %v1940_v15 }
 0x36d   :  { %1632 = vst.msk [vmem:[#allocation3 + $0x1a] sm:$0x3] %vm1304_vm4, %v2083_v29  ;;  %v1992_v8 = vpack.i.bf16 %v1488_v4, %v1484_v3  ;;  %v1482_v9 = vld [vmem:[#allocation3 + $0x10] sm:$0xff]  ;;  %v1939_v3 = vld [vmem:[%s3162_s4 + $0x318] sm:$0xff] }
 0x36e   :  { %1630 = vst.msk [vmem:[#allocation3 + $0x10] sm:$0x3] %vm1304_vm4, %v2083_v29  ;;  %v1894_v29 = vld [vmem:[%s3162_s4 + $0x1c0] sm:$0xff]  ;;  %v1486_v27 = vld [vmem:[#allocation3 + $0x12] sm:$0xff]  ;;  %1747 = vmatpush.msra.mxu3 %v1939_v3 }
 0x36f   :  { %1993 = vrot.lane.b32.xlu1 %v1992_v8, %s2084_s30  ;;  %1596 = vmatpush.msra.mxu2 %v1894_v29  ;;  %v1938_v4 = vld [vmem:[%s3162_s4 + $0x310] sm:$0xff]  ;;  %v1937_v8 = vld [vmem:[%s3162_s4 + $0x308] sm:$0xff] }
 0x370   :  { %1748 = vmatpush.msra.mxu3 %v1938_v4 }
 0x371   :  { %1962 = vmatpush.msrb.mxu2 %v1959_v63  ;;  %v1924_v63 = vld [vmem:[%s3162_s4 + $0x2a0] sm:$0xff] }
 0x372   :  { %1749 = vmatpush.msra.mxu3 %v1937_v8 }
 0x373   :  { %1963 = vmatpush.msrb.mxu2 %v1958_v20 }
 0x375   :  { %1964 = vmatpush.msrb.mxu2 %v1957_v38 }
 0x377   :  { %1965 = vmatpush.msrb.mxu2 %v1956_v5 }
 0x379   :  { %1966 = vmatpush.msrb.mxu2 %v1955_v28  ;;  %v1922_v28 = vld [vmem:[%s3162_s4 + $0x290] sm:$0xff] }
 0x37b   :  { %1967 = vmatpush.msrb.mxu2 %v1954_v30  ;;  %v1920_v30 = vld [vmem:[%s3162_s4 + $0x280] sm:$0xff] }
 0x37d   :  { %1968 = vmatpush.msrb.mxu2 %v1953_v31 }
 0x37f   :  { %1969 = vmatpush.msrb.mxu2 %v1952_v32 }
 0x3d5   :  { %v1989_v14 = vpop.permute.xlu0 %1988 }
 0x3d6   :  { %v1991_v13 = vunpack.i.h.bf16 %v1989_v14  ;;  %v1990_v60 = vunpack.i.l.bf16 %v1989_v14  ;;  %v1936_v14 = vld [vmem:[%s3162_s4 + $0x300] sm:$0xff] }
 0x3d7   :  { %1750 = vmatpush.msra.mxu3 %v1936_v14 }
 0x3d8   :  { %v1507_v62 = vsel %vm1309_vm5, %v1481_v58, %v1990_v60  ;;  %v1509_v17 = vsel %vm1309_vm5, %v1485_v16, %v1991_v13  ;;  %v1935_v13 = vld [vmem:[%s3162_s4 + $0x2f8] sm:$0xff]  ;;  %v1934_v60 = vld [vmem:[%s3162_s4 + $0x2f0] sm:$0xff]  ;;  %v1933_v16 = vld [vmem:[%s3162_s4 + $0x2e8] sm:$0xff] }
 0x3d9   :  { %1574 = vmatmul.f32.vlgmr.msrb.gmra.mxu3 %v1507_v62  ;;  %1597 = vmatmul.f32.vlgmr.msra.gmra.mxu2 %v1509_v17  ;;  %v1932_v62 = vld [vmem:[%s3162_s4 + $0x2e0] sm:$0xff]  ;;  %v1931_v17 = vld [vmem:[%s3162_s4 + $0x2d8] sm:$0xff] }
 0x3da   :  { %1712 = vmatpush.msra.mxu1 %v1935_v13 }
 0x3dc   :  { %v1621_v25 = vpop.f32.mrf.mxu0  ;;  %1713 = vmatpush.msra.mxu1 %v1934_v60 }
 0x3de   :  { %1714 = vmatpush.msra.mxu1 %v1933_v16 }
 0x3e0   :  { %1715 = vmatpush.msra.mxu1 %v1932_v62 }
 0x3e1   :  { %v1994_v7 = vpop.permute.xlu1 %1993 }
 0x3e2   :  { %v1996_v19 = vunpack.i.h.bf16 %v1994_v7  ;;  %v1995_v55 = vunpack.i.l.bf16 %v1994_v7  ;;  %v1930_v7 = vld [vmem:[%s3162_s4 + $0x2d0] sm:$0xff]  ;;  %1716 = vmatpush.msra.mxu1 %v1931_v17 }
 0x3e4   :  { %v1508_v52 = vsel %vm1309_vm5, %v1482_v9, %v1995_v55  ;;  %v1510_v22 = vsel %vm1309_vm5, %v1486_v27, %v1996_v19  ;;  %v1929_v19 = vld [vmem:[%s3162_s4 + $0x2c8] sm:$0xff]  ;;  %1717 = vmatpush.msra.mxu1 %v1930_v7  ;;  %v1928_v55 = vld [vmem:[%s3162_s4 + $0x2c0] sm:$0xff]  ;;  %v1927_v27 = vld [vmem:[%s3162_s4 + $0x2b8] sm:$0xff] }
 0x3e5   :  { %1577 = vmatmul.f32.gmra.mxu3 %v1508_v52  ;;  %1600 = vmatmul.f32.gmra.mxu2 %v1510_v22  ;;  %v1926_v52 = vld [vmem:[%s3162_s4 + $0x2b0] sm:$0xff]  ;;  %v1925_v22 = vld [vmem:[%s3162_s4 + $0x2a8] sm:$0xff]  ;;  %s2085_s4 = smov [#allocation7]  }
 0x3e6   :  { %1718 = vmatpush.msra.mxu1 %v1929_v19  ;;  %s1845_s0 = sshll.u32 %s2085_s4, 4  ;;  %s1846_s0 = int_to_ptr.vmem [resolvable:$true] %s1845_s0 }
 0x3e8   :  { %v1624_v58 = vpop.f32.mrf.mxu0  ;;  %1719 = vmatpush.msra.mxu1 %v1928_v55 }
 0x3ea   :  { %1720 = vmatpush.msra.mxu1 %v1927_v27 }
 0x3ec   :  { %1721 = vmatpush.msra.mxu1 %v1926_v52 }
 0x3ee   :  { %1722 = vmatpush.msra.mxu1 %v1925_v22 }
 0x3f0   :  { %1723 = vmatpush.msra.mxu1 %v1924_v63 }
 0x3f2   :  { %1724 = vmatpush.msra.mxu1 %v1923_v57 }
 0x3f4   :  { %1725 = vmatpush.msra.mxu1 %v1922_v28 }
 0x3f6   :  { %1726 = vmatpush.msra.mxu1 %v1921_v24 }
 0x3f8   :  { %1727 = vmatpush.msra.mxu1 %v1920_v30 }
 0x45c   :  { %v1575_v23 = vpop.f32.mrf.mxu3  ;;  %v1598_v39 = vpop.f32.mrf.mxu2 }
 0x45d   :  { %v1599_v41 = vadd.f32 %v1598_v39, %v1575_v23 }
 0x45f   :  { %v1622_v54 = vadd.f32 %v1621_v25, %v1599_v41 }
 0x461   :  { %v3039_v48 = vadd.f32 %v1622_v54, %v3032_v51 }
 0x463   :  { %1633 = vst.msk [vmem:[#allocation3 + $0x2] sm:$0xff] %vm1309_vm5, %v3039_v48 }
 0x468   :  { %v1578_v49 = vpop.f32.mrf.mxu3  ;;  %v1601_v50 = vpop.f32.mrf.mxu2 }
 0x469   :  { %v1602_v56 = vadd.f32 %v1601_v50, %v1578_v49 }
 0x46a   :  { %v1641_v61 = vld [vmem:[#allocation3 + $0x3] sm:$0xff] }
 0x46b   :  { %v1625_v59 = vadd.f32 %v1624_v58, %v1602_v56  ;;  %v1643_v0 = vld [vmem:[#allocation3 + $0x4] sm:$0xff]  ;;  %1655 = vrot.lane.b32.xlu2 %v1641_v61, %s2084_s30 }
 0x46c   :  { %1960 = vmatmul.msk.f32.vlgmr.msrb.gmra.mxu0 %vm1309_vm5, %v1643_v0  ;;  %v1637_v9 = vld [vmem:[#allocation3 + $0x1] sm:$0xff] }
 0x46d   :  { %v3063_v1 = vadd.f32 %v1625_v59, %v3057_v44  ;;  %v1639_v20 = vld [vmem:[#allocation3 + $0x2] sm:$0xff] }
 0x46e   :  { %v1635_v35 = vld [vmem:[#allocation3] sm:$0xff] }
 0x46f   :  { %1634 = vst.msk [vmem:[#allocation3 + $0x12] sm:$0xff] %vm1309_vm5, %v3063_v1 }
 0x476   :  { %v1644_v10 = vld [vmem:[#allocation3 + $0x14] sm:$0xff] }
 0x477   :  { %v1638_v11 = vld [vmem:[#allocation3 + $0x11] sm:$0xff]  ;;  %1961 = vmatmul.msk.f32.vlgmr.msrb.gmra.mxu2 %vm1309_vm5, %v1644_v10 }
 0x478   :  { %v1642_v12 = vld [vmem:[#allocation3 + $0x13] sm:$0xff]  ;;  %1649 = vrot.lane.b32.xlu1 %v1638_v11, %s2084_s30 }
 0x479   :  { %v1997_v29 = vpack.i.bf16 %v1642_v12, %v1637_v9  ;;  %v1640_v6 = vld [vmem:[#allocation3 + $0x12] sm:$0xff] }
 0x47a   :  { %v1636_v39 = vld [vmem:[#allocation3 + $0x10] sm:$0xff] }
 0x47b   :  { %1998 = vrot.lane.b32.xlu0 %v1997_v29, %s2084_s30 }
 0x4c5   :  { %v1656_v38 = vpop.permute.xlu2 %1655 }
 0x4c6   :  { %v1663_v5 = vsel %vm1309_vm5, %v1639_v20, %v1656_v38 }
 0x4c7   :  { %1751 = vmatmul.f32.vlgmr.msra.gmra.mxu3 %v1663_v5 }
 0x4e9   :  { %v1775_v54 = vpop.f32.mrf.mxu0 }
 0x4ea   :  { %v1650_v23 = vpop.permute.xlu1 %1649 }
 0x4eb   :  { %v1662_v40 = vsel %vm1309_vm5, %v1636_v39, %v1650_v23 }
 0x4ed   :  { %v1999_v31 = vpop.permute.xlu0 %1998 }
 0x4ee   :  { %v2001_v32 = vunpack.i.h.bf16 %v1999_v31  ;;  %v2000_v34 = vunpack.i.l.bf16 %v1999_v31 }
 0x4f0   :  { %v1661_v36 = vsel %vm1309_vm5, %v1635_v35, %v2000_v34  ;;  %v1664_v26 = vsel %vm1309_vm5, %v1640_v6, %v2001_v32 }
 0x4f1   :  { %1728 = vmatmul.f32.vlgmr.msra.gmra.mxu1 %v1661_v36  ;;  %1754 = vmatmul.f32.gmra.mxu3 %v1664_v26 }
 0x4f9   :  { %1731 = vmatmul.f32.gmra.mxu1 %v1662_v40 }
 0x4fa   :  { %v1778_v18 = vpop.f32.mrf.mxu2 }
 0x54a   :  { %v1752_v41 = vpop.f32.mrf.mxu3 }
 0x56e   :  { %v1729_v43 = vpop.f32.mrf.mxu1 }
 0x56f   :  { %v1753_v25 = vadd.f32 %v1752_v41, %v1729_v43 }
 0x571   :  { %v1776_v45 = vadd.f32 %v1775_v54, %v1753_v25 }
 0x573   :  { %1783 = vrot.lane.b32.xlu2 %v1776_v45, %s2084_s30 }
 0x574   :  { %v1755_v46 = vpop.f32.mrf.mxu3 }
 0x576   :  { %v1732_v47 = vpop.f32.mrf.mxu1 }
 0x577   :  { %v1756_v37 = vadd.f32 %v1755_v46, %v1732_v47 }
 0x579   :  { %v1779_v2 = vadd.f32 %v1778_v18, %v1756_v37 }
 0x57b   :  { %1785 = vrot.lane.b32.xlu0 %v1779_v2, %s2084_s30  ;;  %s1859_s30 = sshll.u32 %s2086_s5, 4  ;;  %s1860_s30 = int_to_ptr.vmem [resolvable:$true] %s1859_s30 }
 0x5cd   :  { %v1784_v49 = vpop.permute.xlu2 %1783 }
 0x5ce   :  { %v1789_v50 = vadd.f32 %v1784_v49, %v3032_v51 }
 0x5d0   :  { %v1793_v53 = vsel %vm1309_vm5, %v3039_v48, %v1789_v50 }
 0x5d1   :  { %1796 = vst [vmem:[#allocation7 + $0x8] sm:$0xff] %v1793_v53  ;;  %v1814_v59 = vmul.f32 %v1793_v53, %v1793_v53 }
 0x5ed   :  { %v1786_v56 = vpop.permute.xlu0 %1785 }
 0x5ee   :  { %v1790_v42 = vadd.f32 %v1786_v56, %v3057_v44 }
 0x5f0   :  { %v1794_v58 = vsel %vm1309_vm5, %v3063_v1, %v1790_v42 }
 0x5f1   :  { %1798 = vst [vmem:[#allocation7 + $0x18] sm:$0xff] %v1794_v58  ;;  %v1806_v51 = vadd.f32 %v1794_v58, %v1793_v53  ;;  %v1816_v33 = vmul.f32 %v1794_v58, %v1794_v58 }
 0x5f2   :  { %1853 = dma.vmem_to_hbm [thread:$0]  %s1846_s0, 512, %s1848_s3, [#allocation6], %s2081_s26, %s2081_s26, %s2082_s27  }
 0x5f3   :  { %v1807_v48 = vrot.slane %v1806_v51, 4  ;;  %v1824_v61 = vadd.f32 %v1816_v33, %v1814_v59 }
 0x5f5   :  { %v1808_v0 = vadd.f32 %v1807_v48, %v1806_v51  ;;  %v1825_v15 = vrot.slane %v1824_v61, 4 }
 0x5f7   :  { %v1809_v3 = vrot.slane %v1808_v0, 2  ;;  %v1826_v4 = vadd.f32 %v1825_v15, %v1824_v61 }
 0x5f9   :  { %v1810_v44 = vadd.f32 %v1809_v3, %v1808_v0  ;;  %v1827_v8 = vrot.slane %v1826_v4, 2 }
 0x5fb   :  { %v1811_v9 = vrot.slane %v1810_v44, 1  ;;  %v1828_v10 = vadd.f32 %v1827_v8, %v1826_v4 }
 0x5fd   :  { %v1829_v11 = vrot.slane %v1828_v10, 1  ;;  %v1812_v1 = vadd.f32 %v1811_v9, %v1810_v44 }
 0x5ff   :  { %v1830_v12 = vadd.f32 %v1829_v11, %v1828_v10 }
 0x601   :  { %v1833_v29 = vsel %vm1831_vm6, %v1812_v1, %v1830_v12 }
 0x602   :  { %v1836_v14 = vrot.slane %v1833_v29, 6 }
 0x604   :  { %v1838_v13 = vsel %vm1837_vm7, %v2863_v21, %v1836_v14 }
 0x605   :  { %1840 = vst [vmem:[#allocation8] sm:$0xf] %v1838_v13 }
 0x606   :  { %1864 = dma.vmem_to_hbm [thread:$0]  %s1860_s30, 64, %s1862_s10, [#allocation9]  }
 0x607   :  { %2076 = dma.done.wait [#allocation6], 512  }
 0x608   :  { %2077 = vsyncadd [#allocation6], 4294966784 }
 0x609   :  { %2078 = dma.done.wait [#allocation9], 64  }
 0x60a   :  { %2079 = vsyncadd [#allocation9], 4294967232 }
 0x60b   :  { %1873 = vsyncpa [#allocation5], 1 }
 0x60c   :  { %1874 = vsyncpa [#allocation6], 1 }
 0x60d   :  { %1875 = vsyncpa [#allocation9], 1 }

</bundles_post_ra>
